<compile_context>
chip_gen: v5e
topology: v5e:2x2
jax: 0.10.0
libtpu: 0.0.40
codegen_flags: <defaults>
</compile_context>

<pallas_src>
import functools

import jax
import jax.numpy as jnp
from jax import lax
from jax.experimental import pallas as pl
from jax.experimental.pallas import tpu as pltpu

BN_EPS = 1e-5


# --------------------------------------------------------------------------
# Fused kernel: whole RRCNN block for one image
# --------------------------------------------------------------------------
def _rrcnn_kernel(x_ref, w1_ref, b1_ref, w9a_ref, sha_ref, w9b_ref, shb_ref,
                  o_ref, *, H, W, t):
    """Activations laid out (channels, H*W); H*W is the lane (minor) axis."""
    HW = H * W
    x = x_ref[0]                                            # (Cin, HW) f32

    # ---- Conv_1x1:  (Cout, Cin) @ (Cin, HW) + bias --------------------------
    x0 = jnp.dot(w1_ref[...], x,
                 preferred_element_type=jnp.float32) + b1_ref[...]   # (C, HW)

    # ---- boundary masks for the 9 conv taps (built once, reused by all 6 convs)
    pos = lax.broadcasted_iota(jnp.int32, (1, HW), 1)
    if (W & (W - 1)) == 0:                                  # power-of-two fast path
        rr = pos >> (W.bit_length() - 1)
        cc = pos & (W - 1)
    else:
        # TODO(synk): vector s32 div for non power-of-two W.
        rr = pos // W
        cc = pos - rr * W

    taps_meta = []
    for k in range(9):
        dy, dx = k // 3 - 1, k % 3 - 1
        conds = []
        if dy == -1:
            conds.append(rr >= 1)
        if dy == 1:
            conds.append(rr <= H - 2)
        if dx == -1:
            conds.append(cc >= 1)
        if dx == 1:
            conds.append(cc <= W - 2)
        mask = None
        if conds:
            m = conds[0]
            for c in conds[1:]:
                m = jnp.logical_and(m, c)
            mask = m.astype(jnp.float32)                    # (1, HW) 0/1
        taps_meta.append((dy * W + dx, mask))

    # ---- fused 3x3 conv (BN scale pre-folded into weights) + shift + ReLU ---
    def conv3x3(z, w_mat, shift):
        # im2col: 9 shifted + boundary-masked copies stacked along channels.
        taps = []
        for d, mask in taps_meta:
            r = z if d == 0 else jnp.roll(z, -d, axis=1)    # static lane rotate
            taps.append(r if mask is None else r * mask)
        patches = jnp.concatenate(taps, axis=0)             # (9*C, HW)
        acc = jnp.dot(w_mat, patches,                       # one MXU matmul, K=9*C
                      preferred_element_type=jnp.float32)
        return jnp.maximum(acc + shift, 0.0)                # folded BN + ReLU

    def recurrent(z, w_mat, shift):
        x1 = conv3x3(z, w_mat, shift)                       # i == 0: x1 = conv(x)
        for _ in range(t):
            x1 = conv3x3(z + x1, w_mat, shift)              # x1 = conv(x + x1)
        return x1

    a = recurrent(x0, w9a_ref[...], sha_ref[...])
    b = recurrent(a, w9b_ref[...], shb_ref[...])
    o_ref[0] = (x0 + b).astype(o_ref.dtype)                 # fused RRCNN residual


# --------------------------------------------------------------------------
# Wrapper
# --------------------------------------------------------------------------
def _fold_conv_bn(p):
    """Fold eval-mode BN into the 3x3 conv: scale -> weights, rest -> shift.

    Returns w_mat (Cout, 9*Cin) in tap-major / channel-minor order matching the
    kernel's im2col stacking, and shift (Cout, 1).
    """
    w = p["w"]                                              # (Cout, Cin, 3, 3)
    Cout, Cin = w.shape[0], w.shape[1]
    inv_std = 1.0 / jnp.sqrt(p["var"] + BN_EPS)
    scale = p["gamma"] * inv_std                            # (Cout,)
    shift = p["beta"] + scale * (p["b"] - p["mean"])        # (Cout,) incl. conv bias
    w_scaled = w * scale[:, None, None, None]               # fold scale into weights
    w_mat = jnp.transpose(w_scaled, (0, 2, 3, 1)).reshape(Cout, 9 * Cin)
    return w_mat, shift.reshape(Cout, 1)


def rrcnn_block_forward(x_nchw, params, *, t=2):
    """Mirrors RRCNN_block.forward: x = Conv_1x1(x); x1 = RCNN(x); return x + x1."""
    N, Cin, H, W = x_nchw.shape
    Cout = params["conv1x1"]["w"].shape[0]
    HW = H * W

    x_flat = x_nchw.reshape(N, Cin, HW)                     # NCHW -> (N, C, H*W), free
    w1 = params["conv1x1"]["w"][:, :, 0, 0]                 # (Cout, Cin)
    b1 = params["conv1x1"]["b"].reshape(Cout, 1)
    w9a, sha = _fold_conv_bn(params["rb1"])
    w9b, shb = _fold_conv_bn(params["rb2"])

    kernel = functools.partial(_rrcnn_kernel, H=H, W=W, t=t)
    out = pl.pallas_call(
        kernel,
        out_shape=jax.ShapeDtypeStruct((N, Cout, HW), x_nchw.dtype),
        grid_spec=pltpu.PrefetchScalarGridSpec(
            num_scalar_prefetch=0,
            grid=(N,),
            in_specs=[
                pl.BlockSpec((1, Cin, HW), lambda n: (n, 0, 0)),
                pl.BlockSpec((Cout, Cin), lambda n: (0, 0)),
                pl.BlockSpec((Cout, 1), lambda n: (0, 0)),
                pl.BlockSpec((Cout, 9 * Cout), lambda n: (0, 0)),
                pl.BlockSpec((Cout, 1), lambda n: (0, 0)),
                pl.BlockSpec((Cout, 9 * Cout), lambda n: (0, 0)),
                pl.BlockSpec((Cout, 1), lambda n: (0, 0)),
            ],
            out_specs=pl.BlockSpec((1, Cout, HW), lambda n: (n, 0, 0)),
        ),
        compiler_params=pltpu.CompilerParams(
            dimension_semantics=("parallel",)),
    )(x_flat, w1, b1, w9a, sha, w9b, shb)
    return out.reshape(N, Cout, H, W)


# --------------------------------------------------------------------------
# Pure-JAX reference (for verification)
# --------------------------------------------------------------------------
def _ref_conv2d(x, w, b, padding):
    y = lax.conv_general_dilated(
        x, w, window_strides=(1, 1), padding=padding,
        dimension_numbers=("NCHW", "OIHW", "NCHW"),
        precision=lax.Precision.HIGHEST)
    return y + b[None, :, None, None]


def _ref_bn_relu(x, p):
    inv = 1.0 / jnp.sqrt(p["var"] + BN_EPS)
    y = (x - p["mean"][None, :, None, None]) * (p["gamma"] * inv)[None, :, None, None] \
        + p["beta"][None, :, None, None]
    return jnp.maximum(y, 0.0)


def _ref_recurrent(x, p, t):
    conv = lambda z: _ref_bn_relu(_ref_conv2d(z, p["w"], p["b"], ((1, 1), (1, 1))), p)
    x1 = None
    for i in range(t):
        if i == 0:
            x1 = conv(x)
        x1 = conv(x + x1)
    return x1


def rrcnn_reference(x, params, *, t=2):
    x0 = _ref_conv2d(x, params["conv1x1"]["w"], params["conv1x1"]["b"], ((0, 0), (0, 0)))
    a = _ref_recurrent(x0, params["rb1"], t)
    b = _ref_recurrent(a, params["rb2"], t)
    return x0 + b


# --------------------------------------------------------------------------
# Parameter init (PyTorch-shaped)
# --------------------------------------------------------------------------
def init_params(key, ch_in, ch_out):
    ks = jax.random.split(key, 4)

    def conv_w(k, co, ci, kh, kw):
        bound = 1.0 / float((ci * kh * kw) ** 0.5)
        return jax.random.uniform(k, (co, ci, kh, kw), jnp.float32, -bound, bound)

    def conv_b(k, co, ci, kh, kw):
        bound = 1.0 / float((ci * kh * kw) ** 0.5)
        return jax.random.uniform(k, (co,), jnp.float32, -bound, bound)

    def rb(k):
        k1, k2, k3, k4, k5, k6 = jax.random.split(k, 6)
        return {
            "w": conv_w(k1, ch_out, ch_out, 3, 3),
            "b": conv_b(k2, ch_out, ch_out, 3, 3),
            "gamma": jax.random.uniform(k3, (ch_out,), jnp.float32, 0.5, 1.5),
            "beta": 0.1 * jax.random.normal(k4, (ch_out,), jnp.float32),
            "mean": 0.1 * jax.random.normal(k5, (ch_out,), jnp.float32),
            "var": jax.random.uniform(k6, (ch_out,), jnp.float32, 0.5, 1.5),
        }

    return {
        "conv1x1": {"w": conv_w(ks[0], ch_out, ch_in, 1, 1),
                    "b": conv_b(ks[1], ch_out, ch_in, 1, 1)},
        "rb1": rb(ks[2]),
        "rb2": rb(ks[3]),
    }


if __name__ == "__main__":
    key = jax.random.PRNGKey(0)
    k_x, k_p = jax.random.split(key)

    N, ch_in, ch_out, H, W, t = 2, 8, 4, 16, 16, 2
    x = jax.random.normal(k_x, (N, ch_in, H, W), dtype=jnp.float32)
    params = init_params(k_p, ch_in, ch_out)

    forward = jax.jit(functools.partial(rrcnn_block_forward, t=t))
    out = jax.block_until_ready(forward(x, params))

    assert out.shape == (N, ch_out, H, W), out.shape
    ref = rrcnn_reference(x, params, t=t)
    err = float(jnp.max(jnp.abs(out - ref)))
    assert jnp.allclose(out, ref, atol=5e-4, rtol=5e-4), err

    print("KERNEL_OK")
</pallas_src>

<mosaic_0001>
module attributes {stable_mosaic.version = 11 : i64} {
  func.func @_rrcnn_kernel(%arg0: i32, %arg1: memref<1x8x256xf32, #tpu.memory_space<vmem>>, %arg2: memref<4x8xf32, #tpu.memory_space<vmem>>, %arg3: memref<4x1xf32, #tpu.memory_space<vmem>>, %arg4: memref<4x36xf32, #tpu.memory_space<vmem>>, %arg5: memref<4x1xf32, #tpu.memory_space<vmem>>, %arg6: memref<4x36xf32, #tpu.memory_space<vmem>>, %arg7: memref<4x1xf32, #tpu.memory_space<vmem>>, %arg8: memref<1x4x256xf32, #tpu.memory_space<vmem>>) attributes {dimension_semantics = [#tpu.dimension_semantics<parallel>], iteration_bounds = array<i64: 2>, scalar_prefetch = 0 : i64, scratch_operands = 0 : i64, tpu.core_type = #tpu.core_type<tc>, window_params = [{transform_indices = @transform_0, window_bounds = array<i64: 1, 8, 256>}, {pipeline_mode = #tpu.pipeline_mode<synchronous>, transform_indices = @transform_1, window_bounds = array<i64: 4, 8>}, {pipeline_mode = #tpu.pipeline_mode<synchronous>, transform_indices = @transform_2, window_bounds = array<i64: 4, 1>}, {pipeline_mode = #tpu.pipeline_mode<synchronous>, transform_indices = @transform_3, window_bounds = array<i64: 4, 36>}, {pipeline_mode = #tpu.pipeline_mode<synchronous>, transform_indices = @transform_4, window_bounds = array<i64: 4, 1>}, {pipeline_mode = #tpu.pipeline_mode<synchronous>, transform_indices = @transform_5, window_bounds = array<i64: 4, 36>}, {pipeline_mode = #tpu.pipeline_mode<synchronous>, transform_indices = @transform_6, window_bounds = array<i64: 4, 1>}, {transform_indices = @transform_7, window_bounds = array<i64: 1, 4, 256>}]} {
    %c0 = arith.constant 0 : index
    %c0_0 = arith.constant 0 : index
    %c0_1 = arith.constant 0 : index
    %0 = vector.load %arg1[%c0, %c0_0, %c0_1] : memref<1x8x256xf32, #tpu.memory_space<vmem>>, vector<1x8x256xf32>
    %1 = vector.shape_cast %0 : vector<1x8x256xf32> to vector<8x256xf32>
    %c0_2 = arith.constant 0 : index
    %c0_3 = arith.constant 0 : index
    %2 = vector.load %arg2[%c0_2, %c0_3] : memref<4x8xf32, #tpu.memory_space<vmem>>, vector<4x8xf32>
    %cst = arith.constant dense<0.000000e+00> : vector<4x256xf32>
    %3 = tpu.matmul %2, %1, %cst {dimension_numbers = #tpu.dot_dimension_numbers<[1], [0], [0], [1], [0, 0, 1, 1], [], []>} : vector<4x8xf32>, vector<8x256xf32>, vector<4x256xf32> -> vector<4x256xf32>
    %c0_4 = arith.constant 0 : index
    %c0_5 = arith.constant 0 : index
    %4 = vector.load %arg3[%c0_4, %c0_5] : memref<4x1xf32, #tpu.memory_space<vmem>>, vector<4x1xf32>
    %5 = vector.broadcast %4 : vector<4x1xf32> to vector<4x256xf32>
    %6 = arith.addf %3, %5 : vector<4x256xf32>
    %7 = tpu.iota {dimensions = array<i32: 1>} : vector<1x256xi32>
    %c4_i32 = arith.constant 4 : i32
    %8 = vector.broadcast %c4_i32 : i32 to vector<1x256xi32>
    %9 = arith.shrsi %7, %8 : vector<1x256xi32>
    %c15_i32 = arith.constant 15 : i32
    %10 = vector.broadcast %c15_i32 : i32 to vector<1x256xi32>
    %11 = arith.andi %7, %10 : vector<1x256xi32>
    %c1_i32 = arith.constant 1 : i32
    %12 = vector.broadcast %c1_i32 : i32 to vector<1x256xi32>
    %13 = arith.cmpi sge, %9, %12 : vector<1x256xi32>
    %c1_i32_6 = arith.constant 1 : i32
    %14 = vector.broadcast %c1_i32_6 : i32 to vector<1x256xi32>
    %15 = arith.cmpi sge, %11, %14 : vector<1x256xi32>
    %16 = arith.andi %13, %15 : vector<1x256xi1>
    %17 = arith.extui %16 : vector<1x256xi1> to vector<1x256xi32>
    %18 = arith.sitofp %17 : vector<1x256xi32> to vector<1x256xf32>
    %c1_i32_7 = arith.constant 1 : i32
    %19 = vector.broadcast %c1_i32_7 : i32 to vector<1x256xi32>
    %20 = arith.cmpi sge, %9, %19 : vector<1x256xi32>
    %21 = arith.extui %20 : vector<1x256xi1> to vector<1x256xi32>
    %22 = arith.sitofp %21 : vector<1x256xi32> to vector<1x256xf32>
    %c1_i32_8 = arith.constant 1 : i32
    %23 = vector.broadcast %c1_i32_8 : i32 to vector<1x256xi32>
    %24 = arith.cmpi sge, %9, %23 : vector<1x256xi32>
    %c14_i32 = arith.constant 14 : i32
    %25 = vector.broadcast %c14_i32 : i32 to vector<1x256xi32>
    %26 = arith.cmpi sle, %11, %25 : vector<1x256xi32>
    %27 = arith.andi %24, %26 : vector<1x256xi1>
    %28 = arith.extui %27 : vector<1x256xi1> to vector<1x256xi32>
    %29 = arith.sitofp %28 : vector<1x256xi32> to vector<1x256xf32>
    %c1_i32_9 = arith.constant 1 : i32
    %30 = vector.broadcast %c1_i32_9 : i32 to vector<1x256xi32>
    %31 = arith.cmpi sge, %11, %30 : vector<1x256xi32>
    %32 = arith.extui %31 : vector<1x256xi1> to vector<1x256xi32>
    %33 = arith.sitofp %32 : vector<1x256xi32> to vector<1x256xf32>
    %c14_i32_10 = arith.constant 14 : i32
    %34 = vector.broadcast %c14_i32_10 : i32 to vector<1x256xi32>
    %35 = arith.cmpi sle, %11, %34 : vector<1x256xi32>
    %36 = arith.extui %35 : vector<1x256xi1> to vector<1x256xi32>
    %37 = arith.sitofp %36 : vector<1x256xi32> to vector<1x256xf32>
    %c14_i32_11 = arith.constant 14 : i32
    %38 = vector.broadcast %c14_i32_11 : i32 to vector<1x256xi32>
    %39 = arith.cmpi sle, %9, %38 : vector<1x256xi32>
    %c1_i32_12 = arith.constant 1 : i32
    %40 = vector.broadcast %c1_i32_12 : i32 to vector<1x256xi32>
    %41 = arith.cmpi sge, %11, %40 : vector<1x256xi32>
    %42 = arith.andi %39, %41 : vector<1x256xi1>
    %43 = arith.extui %42 : vector<1x256xi1> to vector<1x256xi32>
    %44 = arith.sitofp %43 : vector<1x256xi32> to vector<1x256xf32>
    %c14_i32_13 = arith.constant 14 : i32
    %45 = vector.broadcast %c14_i32_13 : i32 to vector<1x256xi32>
    %46 = arith.cmpi sle, %9, %45 : vector<1x256xi32>
    %47 = arith.extui %46 : vector<1x256xi1> to vector<1x256xi32>
    %48 = arith.sitofp %47 : vector<1x256xi32> to vector<1x256xf32>
    %c14_i32_14 = arith.constant 14 : i32
    %49 = vector.broadcast %c14_i32_14 : i32 to vector<1x256xi32>
    %50 = arith.cmpi sle, %9, %49 : vector<1x256xi32>
    %c14_i32_15 = arith.constant 14 : i32
    %51 = vector.broadcast %c14_i32_15 : i32 to vector<1x256xi32>
    %52 = arith.cmpi sle, %11, %51 : vector<1x256xi32>
    %53 = arith.andi %50, %52 : vector<1x256xi1>
    %54 = arith.extui %53 : vector<1x256xi1> to vector<1x256xi32>
    %55 = arith.sitofp %54 : vector<1x256xi32> to vector<1x256xf32>
    %c0_16 = arith.constant 0 : index
    %c0_17 = arith.constant 0 : index
    %56 = vector.load %arg4[%c0_16, %c0_17] : memref<4x36xf32, #tpu.memory_space<vmem>>, vector<4x36xf32>
    %c0_18 = arith.constant 0 : index
    %c0_19 = arith.constant 0 : index
    %57 = vector.load %arg5[%c0_18, %c0_19] : memref<4x1xf32, #tpu.memory_space<vmem>>, vector<4x1xf32>
    %58 = vector.extract_strided_slice %6 {offsets = [0, 239], sizes = [4, 17], strides = [1, 1]} : vector<4x256xf32> to vector<4x17xf32>
    %59 = vector.extract_strided_slice %6 {offsets = [0, 0], sizes = [4, 239], strides = [1, 1]} : vector<4x256xf32> to vector<4x239xf32>
    %60 = tpu.concatenate %58, %59 in 1 : vector<4x17xf32>, vector<4x239xf32> -> vector<4x256xf32>
    %61 = vector.broadcast %18 : vector<1x256xf32> to vector<4x256xf32>
    %62 = arith.mulf %60, %61 : vector<4x256xf32>
    %63 = vector.extract_strided_slice %6 {offsets = [0, 240], sizes = [4, 16], strides = [1, 1]} : vector<4x256xf32> to vector<4x16xf32>
    %64 = vector.extract_strided_slice %6 {offsets = [0, 0], sizes = [4, 240], strides = [1, 1]} : vector<4x256xf32> to vector<4x240xf32>
    %65 = tpu.concatenate %63, %64 in 1 : vector<4x16xf32>, vector<4x240xf32> -> vector<4x256xf32>
    %66 = vector.broadcast %22 : vector<1x256xf32> to vector<4x256xf32>
    %67 = arith.mulf %65, %66 : vector<4x256xf32>
    %68 = vector.extract_strided_slice %6 {offsets = [0, 241], sizes = [4, 15], strides = [1, 1]} : vector<4x256xf32> to vector<4x15xf32>
    %69 = vector.extract_strided_slice %6 {offsets = [0, 0], sizes = [4, 241], strides = [1, 1]} : vector<4x256xf32> to vector<4x241xf32>
    %70 = tpu.concatenate %68, %69 in 1 : vector<4x15xf32>, vector<4x241xf32> -> vector<4x256xf32>
    %71 = vector.broadcast %29 : vector<1x256xf32> to vector<4x256xf32>
    %72 = arith.mulf %70, %71 : vector<4x256xf32>
    %73 = vector.extract_strided_slice %6 {offsets = [0, 255], sizes = [4, 1], strides = [1, 1]} : vector<4x256xf32> to vector<4x1xf32>
    %74 = vector.extract_strided_slice %6 {offsets = [0, 0], sizes = [4, 255], strides = [1, 1]} : vector<4x256xf32> to vector<4x255xf32>
    %75 = tpu.concatenate %73, %74 in 1 : vector<4x1xf32>, vector<4x255xf32> -> vector<4x256xf32>
    %76 = vector.broadcast %33 : vector<1x256xf32> to vector<4x256xf32>
    %77 = arith.mulf %75, %76 : vector<4x256xf32>
    %78 = vector.extract_strided_slice %6 {offsets = [0, 1], sizes = [4, 255], strides = [1, 1]} : vector<4x256xf32> to vector<4x255xf32>
    %79 = vector.extract_strided_slice %6 {offsets = [0, 0], sizes = [4, 1], strides = [1, 1]} : vector<4x256xf32> to vector<4x1xf32>
    %80 = tpu.concatenate %78, %79 in 1 : vector<4x255xf32>, vector<4x1xf32> -> vector<4x256xf32>
    %81 = vector.broadcast %37 : vector<1x256xf32> to vector<4x256xf32>
    %82 = arith.mulf %80, %81 : vector<4x256xf32>
    %83 = vector.extract_strided_slice %6 {offsets = [0, 15], sizes = [4, 241], strides = [1, 1]} : vector<4x256xf32> to vector<4x241xf32>
    %84 = vector.extract_strided_slice %6 {offsets = [0, 0], sizes = [4, 15], strides = [1, 1]} : vector<4x256xf32> to vector<4x15xf32>
    %85 = tpu.concatenate %83, %84 in 1 : vector<4x241xf32>, vector<4x15xf32> -> vector<4x256xf32>
    %86 = vector.broadcast %44 : vector<1x256xf32> to vector<4x256xf32>
    %87 = arith.mulf %85, %86 : vector<4x256xf32>
    %88 = vector.extract_strided_slice %6 {offsets = [0, 16], sizes = [4, 240], strides = [1, 1]} : vector<4x256xf32> to vector<4x240xf32>
    %89 = vector.extract_strided_slice %6 {offsets = [0, 0], sizes = [4, 16], strides = [1, 1]} : vector<4x256xf32> to vector<4x16xf32>
    %90 = tpu.concatenate %88, %89 in 1 : vector<4x240xf32>, vector<4x16xf32> -> vector<4x256xf32>
    %91 = vector.broadcast %48 : vector<1x256xf32> to vector<4x256xf32>
    %92 = arith.mulf %90, %91 : vector<4x256xf32>
    %93 = vector.extract_strided_slice %6 {offsets = [0, 17], sizes = [4, 239], strides = [1, 1]} : vector<4x256xf32> to vector<4x239xf32>
    %94 = vector.extract_strided_slice %6 {offsets = [0, 0], sizes = [4, 17], strides = [1, 1]} : vector<4x256xf32> to vector<4x17xf32>
    %95 = tpu.concatenate %93, %94 in 1 : vector<4x239xf32>, vector<4x17xf32> -> vector<4x256xf32>
    %96 = vector.broadcast %55 : vector<1x256xf32> to vector<4x256xf32>
    %97 = arith.mulf %95, %96 : vector<4x256xf32>
    %98 = tpu.concatenate %62, %67, %72, %77, %6, %82, %87, %92, %97 in 0 : vector<4x256xf32>, vector<4x256xf32>, vector<4x256xf32>, vector<4x256xf32>, vector<4x256xf32>, vector<4x256xf32>, vector<4x256xf32>, vector<4x256xf32>, vector<4x256xf32> -> vector<36x256xf32>
    %cst_20 = arith.constant dense<0.000000e+00> : vector<4x256xf32>
    %99 = tpu.matmul %56, %98, %cst_20 {dimension_numbers = #tpu.dot_dimension_numbers<[1], [0], [0], [1], [0, 0, 1, 1], [], []>} : vector<4x36xf32>, vector<36x256xf32>, vector<4x256xf32> -> vector<4x256xf32>
    %100 = vector.broadcast %57 : vector<4x1xf32> to vector<4x256xf32>
    %101 = arith.addf %99, %100 : vector<4x256xf32>
    %cst_21 = arith.constant 0.000000e+00 : f32
    %102 = vector.broadcast %cst_21 : f32 to vector<4x256xf32>
    %103 = arith.maximumf %101, %102 : vector<4x256xf32>
    %104 = arith.addf %6, %103 : vector<4x256xf32>
    %105 = vector.extract_strided_slice %104 {offsets = [0, 239], sizes = [4, 17], strides = [1, 1]} : vector<4x256xf32> to vector<4x17xf32>
    %106 = vector.extract_strided_slice %104 {offsets = [0, 0], sizes = [4, 239], strides = [1, 1]} : vector<4x256xf32> to vector<4x239xf32>
    %107 = tpu.concatenate %105, %106 in 1 : vector<4x17xf32>, vector<4x239xf32> -> vector<4x256xf32>
    %108 = vector.broadcast %18 : vector<1x256xf32> to vector<4x256xf32>
    %109 = arith.mulf %107, %108 : vector<4x256xf32>
    %110 = vector.extract_strided_slice %104 {offsets = [0, 240], sizes = [4, 16], strides = [1, 1]} : vector<4x256xf32> to vector<4x16xf32>
    %111 = vector.extract_strided_slice %104 {offsets = [0, 0], sizes = [4, 240], strides = [1, 1]} : vector<4x256xf32> to vector<4x240xf32>
    %112 = tpu.concatenate %110, %111 in 1 : vector<4x16xf32>, vector<4x240xf32> -> vector<4x256xf32>
    %113 = vector.broadcast %22 : vector<1x256xf32> to vector<4x256xf32>
    %114 = arith.mulf %112, %113 : vector<4x256xf32>
    %115 = vector.extract_strided_slice %104 {offsets = [0, 241], sizes = [4, 15], strides = [1, 1]} : vector<4x256xf32> to vector<4x15xf32>
    %116 = vector.extract_strided_slice %104 {offsets = [0, 0], sizes = [4, 241], strides = [1, 1]} : vector<4x256xf32> to vector<4x241xf32>
    %117 = tpu.concatenate %115, %116 in 1 : vector<4x15xf32>, vector<4x241xf32> -> vector<4x256xf32>
    %118 = vector.broadcast %29 : vector<1x256xf32> to vector<4x256xf32>
    %119 = arith.mulf %117, %118 : vector<4x256xf32>
    %120 = vector.extract_strided_slice %104 {offsets = [0, 255], sizes = [4, 1], strides = [1, 1]} : vector<4x256xf32> to vector<4x1xf32>
    %121 = vector.extract_strided_slice %104 {offsets = [0, 0], sizes = [4, 255], strides = [1, 1]} : vector<4x256xf32> to vector<4x255xf32>
    %122 = tpu.concatenate %120, %121 in 1 : vector<4x1xf32>, vector<4x255xf32> -> vector<4x256xf32>
    %123 = vector.broadcast %33 : vector<1x256xf32> to vector<4x256xf32>
    %124 = arith.mulf %122, %123 : vector<4x256xf32>
    %125 = vector.extract_strided_slice %104 {offsets = [0, 1], sizes = [4, 255], strides = [1, 1]} : vector<4x256xf32> to vector<4x255xf32>
    %126 = vector.extract_strided_slice %104 {offsets = [0, 0], sizes = [4, 1], strides = [1, 1]} : vector<4x256xf32> to vector<4x1xf32>
    %127 = tpu.concatenate %125, %126 in 1 : vector<4x255xf32>, vector<4x1xf32> -> vector<4x256xf32>
    %128 = vector.broadcast %37 : vector<1x256xf32> to vector<4x256xf32>
    %129 = arith.mulf %127, %128 : vector<4x256xf32>
    %130 = vector.extract_strided_slice %104 {offsets = [0, 15], sizes = [4, 241], strides = [1, 1]} : vector<4x256xf32> to vector<4x241xf32>
    %131 = vector.extract_strided_slice %104 {offsets = [0, 0], sizes = [4, 15], strides = [1, 1]} : vector<4x256xf32> to vector<4x15xf32>
    %132 = tpu.concatenate %130, %131 in 1 : vector<4x241xf32>, vector<4x15xf32> -> vector<4x256xf32>
    %133 = vector.broadcast %44 : vector<1x256xf32> to vector<4x256xf32>
    %134 = arith.mulf %132, %133 : vector<4x256xf32>
    %135 = vector.extract_strided_slice %104 {offsets = [0, 16], sizes = [4, 240], strides = [1, 1]} : vector<4x256xf32> to vector<4x240xf32>
    %136 = vector.extract_strided_slice %104 {offsets = [0, 0], sizes = [4, 16], strides = [1, 1]} : vector<4x256xf32> to vector<4x16xf32>
    %137 = tpu.concatenate %135, %136 in 1 : vector<4x240xf32>, vector<4x16xf32> -> vector<4x256xf32>
    %138 = vector.broadcast %48 : vector<1x256xf32> to vector<4x256xf32>
    %139 = arith.mulf %137, %138 : vector<4x256xf32>
    %140 = vector.extract_strided_slice %104 {offsets = [0, 17], sizes = [4, 239], strides = [1, 1]} : vector<4x256xf32> to vector<4x239xf32>
    %141 = vector.extract_strided_slice %104 {offsets = [0, 0], sizes = [4, 17], strides = [1, 1]} : vector<4x256xf32> to vector<4x17xf32>
    %142 = tpu.concatenate %140, %141 in 1 : vector<4x239xf32>, vector<4x17xf32> -> vector<4x256xf32>
    %143 = vector.broadcast %55 : vector<1x256xf32> to vector<4x256xf32>
    %144 = arith.mulf %142, %143 : vector<4x256xf32>
    %145 = tpu.concatenate %109, %114, %119, %124, %104, %129, %134, %139, %144 in 0 : vector<4x256xf32>, vector<4x256xf32>, vector<4x256xf32>, vector<4x256xf32>, vector<4x256xf32>, vector<4x256xf32>, vector<4x256xf32>, vector<4x256xf32>, vector<4x256xf32> -> vector<36x256xf32>
    %cst_22 = arith.constant dense<0.000000e+00> : vector<4x256xf32>
    %146 = tpu.matmul %56, %145, %cst_22 {dimension_numbers = #tpu.dot_dimension_numbers<[1], [0], [0], [1], [0, 0, 1, 1], [], []>} : vector<4x36xf32>, vector<36x256xf32>, vector<4x256xf32> -> vector<4x256xf32>
    %147 = vector.broadcast %57 : vector<4x1xf32> to vector<4x256xf32>
    %148 = arith.addf %146, %147 : vector<4x256xf32>
    %cst_23 = arith.constant 0.000000e+00 : f32
    %149 = vector.broadcast %cst_23 : f32 to vector<4x256xf32>
    %150 = arith.maximumf %148, %149 : vector<4x256xf32>
    %151 = arith.addf %6, %150 : vector<4x256xf32>
    %152 = vector.extract_strided_slice %151 {offsets = [0, 239], sizes = [4, 17], strides = [1, 1]} : vector<4x256xf32> to vector<4x17xf32>
    %153 = vector.extract_strided_slice %151 {offsets = [0, 0], sizes = [4, 239], strides = [1, 1]} : vector<4x256xf32> to vector<4x239xf32>
    %154 = tpu.concatenate %152, %153 in 1 : vector<4x17xf32>, vector<4x239xf32> -> vector<4x256xf32>
    %155 = vector.broadcast %18 : vector<1x256xf32> to vector<4x256xf32>
    %156 = arith.mulf %154, %155 : vector<4x256xf32>
    %157 = vector.extract_strided_slice %151 {offsets = [0, 240], sizes = [4, 16], strides = [1, 1]} : vector<4x256xf32> to vector<4x16xf32>
    %158 = vector.extract_strided_slice %151 {offsets = [0, 0], sizes = [4, 240], strides = [1, 1]} : vector<4x256xf32> to vector<4x240xf32>
    %159 = tpu.concatenate %157, %158 in 1 : vector<4x16xf32>, vector<4x240xf32> -> vector<4x256xf32>
    %160 = vector.broadcast %22 : vector<1x256xf32> to vector<4x256xf32>
    %161 = arith.mulf %159, %160 : vector<4x256xf32>
    %162 = vector.extract_strided_slice %151 {offsets = [0, 241], sizes = [4, 15], strides = [1, 1]} : vector<4x256xf32> to vector<4x15xf32>
    %163 = vector.extract_strided_slice %151 {offsets = [0, 0], sizes = [4, 241], strides = [1, 1]} : vector<4x256xf32> to vector<4x241xf32>
    %164 = tpu.concatenate %162, %163 in 1 : vector<4x15xf32>, vector<4x241xf32> -> vector<4x256xf32>
    %165 = vector.broadcast %29 : vector<1x256xf32> to vector<4x256xf32>
    %166 = arith.mulf %164, %165 : vector<4x256xf32>
    %167 = vector.extract_strided_slice %151 {offsets = [0, 255], sizes = [4, 1], strides = [1, 1]} : vector<4x256xf32> to vector<4x1xf32>
    %168 = vector.extract_strided_slice %151 {offsets = [0, 0], sizes = [4, 255], strides = [1, 1]} : vector<4x256xf32> to vector<4x255xf32>
    %169 = tpu.concatenate %167, %168 in 1 : vector<4x1xf32>, vector<4x255xf32> -> vector<4x256xf32>
    %170 = vector.broadcast %33 : vector<1x256xf32> to vector<4x256xf32>
    %171 = arith.mulf %169, %170 : vector<4x256xf32>
    %172 = vector.extract_strided_slice %151 {offsets = [0, 1], sizes = [4, 255], strides = [1, 1]} : vector<4x256xf32> to vector<4x255xf32>
    %173 = vector.extract_strided_slice %151 {offsets = [0, 0], sizes = [4, 1], strides = [1, 1]} : vector<4x256xf32> to vector<4x1xf32>
    %174 = tpu.concatenate %172, %173 in 1 : vector<4x255xf32>, vector<4x1xf32> -> vector<4x256xf32>
    %175 = vector.broadcast %37 : vector<1x256xf32> to vector<4x256xf32>
    %176 = arith.mulf %174, %175 : vector<4x256xf32>
    %177 = vector.extract_strided_slice %151 {offsets = [0, 15], sizes = [4, 241], strides = [1, 1]} : vector<4x256xf32> to vector<4x241xf32>
    %178 = vector.extract_strided_slice %151 {offsets = [0, 0], sizes = [4, 15], strides = [1, 1]} : vector<4x256xf32> to vector<4x15xf32>
    %179 = tpu.concatenate %177, %178 in 1 : vector<4x241xf32>, vector<4x15xf32> -> vector<4x256xf32>
    %180 = vector.broadcast %44 : vector<1x256xf32> to vector<4x256xf32>
    %181 = arith.mulf %179, %180 : vector<4x256xf32>
    %182 = vector.extract_strided_slice %151 {offsets = [0, 16], sizes = [4, 240], strides = [1, 1]} : vector<4x256xf32> to vector<4x240xf32>
    %183 = vector.extract_strided_slice %151 {offsets = [0, 0], sizes = [4, 16], strides = [1, 1]} : vector<4x256xf32> to vector<4x16xf32>
    %184 = tpu.concatenate %182, %183 in 1 : vector<4x240xf32>, vector<4x16xf32> -> vector<4x256xf32>
    %185 = vector.broadcast %48 : vector<1x256xf32> to vector<4x256xf32>
    %186 = arith.mulf %184, %185 : vector<4x256xf32>
    %187 = vector.extract_strided_slice %151 {offsets = [0, 17], sizes = [4, 239], strides = [1, 1]} : vector<4x256xf32> to vector<4x239xf32>
    %188 = vector.extract_strided_slice %151 {offsets = [0, 0], sizes = [4, 17], strides = [1, 1]} : vector<4x256xf32> to vector<4x17xf32>
    %189 = tpu.concatenate %187, %188 in 1 : vector<4x239xf32>, vector<4x17xf32> -> vector<4x256xf32>
    %190 = vector.broadcast %55 : vector<1x256xf32> to vector<4x256xf32>
    %191 = arith.mulf %189, %190 : vector<4x256xf32>
    %192 = tpu.concatenate %156, %161, %166, %171, %151, %176, %181, %186, %191 in 0 : vector<4x256xf32>, vector<4x256xf32>, vector<4x256xf32>, vector<4x256xf32>, vector<4x256xf32>, vector<4x256xf32>, vector<4x256xf32>, vector<4x256xf32>, vector<4x256xf32> -> vector<36x256xf32>
    %cst_24 = arith.constant dense<0.000000e+00> : vector<4x256xf32>
    %193 = tpu.matmul %56, %192, %cst_24 {dimension_numbers = #tpu.dot_dimension_numbers<[1], [0], [0], [1], [0, 0, 1, 1], [], []>} : vector<4x36xf32>, vector<36x256xf32>, vector<4x256xf32> -> vector<4x256xf32>
    %194 = vector.broadcast %57 : vector<4x1xf32> to vector<4x256xf32>
    %195 = arith.addf %193, %194 : vector<4x256xf32>
    %cst_25 = arith.constant 0.000000e+00 : f32
    %196 = vector.broadcast %cst_25 : f32 to vector<4x256xf32>
    %197 = arith.maximumf %195, %196 : vector<4x256xf32>
    %c0_26 = arith.constant 0 : index
    %c0_27 = arith.constant 0 : index
    %198 = vector.load %arg6[%c0_26, %c0_27] : memref<4x36xf32, #tpu.memory_space<vmem>>, vector<4x36xf32>
    %c0_28 = arith.constant 0 : index
    %c0_29 = arith.constant 0 : index
    %199 = vector.load %arg7[%c0_28, %c0_29] : memref<4x1xf32, #tpu.memory_space<vmem>>, vector<4x1xf32>
    %200 = vector.extract_strided_slice %197 {offsets = [0, 239], sizes = [4, 17], strides = [1, 1]} : vector<4x256xf32> to vector<4x17xf32>
    %201 = vector.extract_strided_slice %197 {offsets = [0, 0], sizes = [4, 239], strides = [1, 1]} : vector<4x256xf32> to vector<4x239xf32>
    %202 = tpu.concatenate %200, %201 in 1 : vector<4x17xf32>, vector<4x239xf32> -> vector<4x256xf32>
    %203 = vector.broadcast %18 : vector<1x256xf32> to vector<4x256xf32>
    %204 = arith.mulf %202, %203 : vector<4x256xf32>
    %205 = vector.extract_strided_slice %197 {offsets = [0, 240], sizes = [4, 16], strides = [1, 1]} : vector<4x256xf32> to vector<4x16xf32>
    %206 = vector.extract_strided_slice %197 {offsets = [0, 0], sizes = [4, 240], strides = [1, 1]} : vector<4x256xf32> to vector<4x240xf32>
    %207 = tpu.concatenate %205, %206 in 1 : vector<4x16xf32>, vector<4x240xf32> -> vector<4x256xf32>
    %208 = vector.broadcast %22 : vector<1x256xf32> to vector<4x256xf32>
    %209 = arith.mulf %207, %208 : vector<4x256xf32>
    %210 = vector.extract_strided_slice %197 {offsets = [0, 241], sizes = [4, 15], strides = [1, 1]} : vector<4x256xf32> to vector<4x15xf32>
    %211 = vector.extract_strided_slice %197 {offsets = [0, 0], sizes = [4, 241], strides = [1, 1]} : vector<4x256xf32> to vector<4x241xf32>
    %212 = tpu.concatenate %210, %211 in 1 : vector<4x15xf32>, vector<4x241xf32> -> vector<4x256xf32>
    %213 = vector.broadcast %29 : vector<1x256xf32> to vector<4x256xf32>
    %214 = arith.mulf %212, %213 : vector<4x256xf32>
    %215 = vector.extract_strided_slice %197 {offsets = [0, 255], sizes = [4, 1], strides = [1, 1]} : vector<4x256xf32> to vector<4x1xf32>
    %216 = vector.extract_strided_slice %197 {offsets = [0, 0], sizes = [4, 255], strides = [1, 1]} : vector<4x256xf32> to vector<4x255xf32>
    %217 = tpu.concatenate %215, %216 in 1 : vector<4x1xf32>, vector<4x255xf32> -> vector<4x256xf32>
    %218 = vector.broadcast %33 : vector<1x256xf32> to vector<4x256xf32>
    %219 = arith.mulf %217, %218 : vector<4x256xf32>
    %220 = vector.extract_strided_slice %197 {offsets = [0, 1], sizes = [4, 255], strides = [1, 1]} : vector<4x256xf32> to vector<4x255xf32>
    %221 = vector.extract_strided_slice %197 {offsets = [0, 0], sizes = [4, 1], strides = [1, 1]} : vector<4x256xf32> to vector<4x1xf32>
    %222 = tpu.concatenate %220, %221 in 1 : vector<4x255xf32>, vector<4x1xf32> -> vector<4x256xf32>
    %223 = vector.broadcast %37 : vector<1x256xf32> to vector<4x256xf32>
    %224 = arith.mulf %222, %223 : vector<4x256xf32>
    %225 = vector.extract_strided_slice %197 {offsets = [0, 15], sizes = [4, 241], strides = [1, 1]} : vector<4x256xf32> to vector<4x241xf32>
    %226 = vector.extract_strided_slice %197 {offsets = [0, 0], sizes = [4, 15], strides = [1, 1]} : vector<4x256xf32> to vector<4x15xf32>
    %227 = tpu.concatenate %225, %226 in 1 : vector<4x241xf32>, vector<4x15xf32> -> vector<4x256xf32>
    %228 = vector.broadcast %44 : vector<1x256xf32> to vector<4x256xf32>
    %229 = arith.mulf %227, %228 : vector<4x256xf32>
    %230 = vector.extract_strided_slice %197 {offsets = [0, 16], sizes = [4, 240], strides = [1, 1]} : vector<4x256xf32> to vector<4x240xf32>
    %231 = vector.extract_strided_slice %197 {offsets = [0, 0], sizes = [4, 16], strides = [1, 1]} : vector<4x256xf32> to vector<4x16xf32>
    %232 = tpu.concatenate %230, %231 in 1 : vector<4x240xf32>, vector<4x16xf32> -> vector<4x256xf32>
    %233 = vector.broadcast %48 : vector<1x256xf32> to vector<4x256xf32>
    %234 = arith.mulf %232, %233 : vector<4x256xf32>
    %235 = vector.extract_strided_slice %197 {offsets = [0, 17], sizes = [4, 239], strides = [1, 1]} : vector<4x256xf32> to vector<4x239xf32>
    %236 = vector.extract_strided_slice %197 {offsets = [0, 0], sizes = [4, 17], strides = [1, 1]} : vector<4x256xf32> to vector<4x17xf32>
    %237 = tpu.concatenate %235, %236 in 1 : vector<4x239xf32>, vector<4x17xf32> -> vector<4x256xf32>
    %238 = vector.broadcast %55 : vector<1x256xf32> to vector<4x256xf32>
    %239 = arith.mulf %237, %238 : vector<4x256xf32>
    %240 = tpu.concatenate %204, %209, %214, %219, %197, %224, %229, %234, %239 in 0 : vector<4x256xf32>, vector<4x256xf32>, vector<4x256xf32>, vector<4x256xf32>, vector<4x256xf32>, vector<4x256xf32>, vector<4x256xf32>, vector<4x256xf32>, vector<4x256xf32> -> vector<36x256xf32>
    %cst_30 = arith.constant dense<0.000000e+00> : vector<4x256xf32>
    %241 = tpu.matmul %198, %240, %cst_30 {dimension_numbers = #tpu.dot_dimension_numbers<[1], [0], [0], [1], [0, 0, 1, 1], [], []>} : vector<4x36xf32>, vector<36x256xf32>, vector<4x256xf32> -> vector<4x256xf32>
    %242 = vector.broadcast %199 : vector<4x1xf32> to vector<4x256xf32>
    %243 = arith.addf %241, %242 : vector<4x256xf32>
    %cst_31 = arith.constant 0.000000e+00 : f32
    %244 = vector.broadcast %cst_31 : f32 to vector<4x256xf32>
    %245 = arith.maximumf %243, %244 : vector<4x256xf32>
    %246 = arith.addf %197, %245 : vector<4x256xf32>
    %247 = vector.extract_strided_slice %246 {offsets = [0, 239], sizes = [4, 17], strides = [1, 1]} : vector<4x256xf32> to vector<4x17xf32>
    %248 = vector.extract_strided_slice %246 {offsets = [0, 0], sizes = [4, 239], strides = [1, 1]} : vector<4x256xf32> to vector<4x239xf32>
    %249 = tpu.concatenate %247, %248 in 1 : vector<4x17xf32>, vector<4x239xf32> -> vector<4x256xf32>
    %250 = vector.broadcast %18 : vector<1x256xf32> to vector<4x256xf32>
    %251 = arith.mulf %249, %250 : vector<4x256xf32>
    %252 = vector.extract_strided_slice %246 {offsets = [0, 240], sizes = [4, 16], strides = [1, 1]} : vector<4x256xf32> to vector<4x16xf32>
    %253 = vector.extract_strided_slice %246 {offsets = [0, 0], sizes = [4, 240], strides = [1, 1]} : vector<4x256xf32> to vector<4x240xf32>
    %254 = tpu.concatenate %252, %253 in 1 : vector<4x16xf32>, vector<4x240xf32> -> vector<4x256xf32>
    %255 = vector.broadcast %22 : vector<1x256xf32> to vector<4x256xf32>
    %256 = arith.mulf %254, %255 : vector<4x256xf32>
    %257 = vector.extract_strided_slice %246 {offsets = [0, 241], sizes = [4, 15], strides = [1, 1]} : vector<4x256xf32> to vector<4x15xf32>
    %258 = vector.extract_strided_slice %246 {offsets = [0, 0], sizes = [4, 241], strides = [1, 1]} : vector<4x256xf32> to vector<4x241xf32>
    %259 = tpu.concatenate %257, %258 in 1 : vector<4x15xf32>, vector<4x241xf32> -> vector<4x256xf32>
    %260 = vector.broadcast %29 : vector<1x256xf32> to vector<4x256xf32>
    %261 = arith.mulf %259, %260 : vector<4x256xf32>
    %262 = vector.extract_strided_slice %246 {offsets = [0, 255], sizes = [4, 1], strides = [1, 1]} : vector<4x256xf32> to vector<4x1xf32>
    %263 = vector.extract_strided_slice %246 {offsets = [0, 0], sizes = [4, 255], strides = [1, 1]} : vector<4x256xf32> to vector<4x255xf32>
    %264 = tpu.concatenate %262, %263 in 1 : vector<4x1xf32>, vector<4x255xf32> -> vector<4x256xf32>
    %265 = vector.broadcast %33 : vector<1x256xf32> to vector<4x256xf32>
    %266 = arith.mulf %264, %265 : vector<4x256xf32>
    %267 = vector.extract_strided_slice %246 {offsets = [0, 1], sizes = [4, 255], strides = [1, 1]} : vector<4x256xf32> to vector<4x255xf32>
    %268 = vector.extract_strided_slice %246 {offsets = [0, 0], sizes = [4, 1], strides = [1, 1]} : vector<4x256xf32> to vector<4x1xf32>
    %269 = tpu.concatenate %267, %268 in 1 : vector<4x255xf32>, vector<4x1xf32> -> vector<4x256xf32>
    %270 = vector.broadcast %37 : vector<1x256xf32> to vector<4x256xf32>
    %271 = arith.mulf %269, %270 : vector<4x256xf32>
    %272 = vector.extract_strided_slice %246 {offsets = [0, 15], sizes = [4, 241], strides = [1, 1]} : vector<4x256xf32> to vector<4x241xf32>
    %273 = vector.extract_strided_slice %246 {offsets = [0, 0], sizes = [4, 15], strides = [1, 1]} : vector<4x256xf32> to vector<4x15xf32>
    %274 = tpu.concatenate %272, %273 in 1 : vector<4x241xf32>, vector<4x15xf32> -> vector<4x256xf32>
    %275 = vector.broadcast %44 : vector<1x256xf32> to vector<4x256xf32>
    %276 = arith.mulf %274, %275 : vector<4x256xf32>
    %277 = vector.extract_strided_slice %246 {offsets = [0, 16], sizes = [4, 240], strides = [1, 1]} : vector<4x256xf32> to vector<4x240xf32>
    %278 = vector.extract_strided_slice %246 {offsets = [0, 0], sizes = [4, 16], strides = [1, 1]} : vector<4x256xf32> to vector<4x16xf32>
    %279 = tpu.concatenate %277, %278 in 1 : vector<4x240xf32>, vector<4x16xf32> -> vector<4x256xf32>
    %280 = vector.broadcast %48 : vector<1x256xf32> to vector<4x256xf32>
    %281 = arith.mulf %279, %280 : vector<4x256xf32>
    %282 = vector.extract_strided_slice %246 {offsets = [0, 17], sizes = [4, 239], strides = [1, 1]} : vector<4x256xf32> to vector<4x239xf32>
    %283 = vector.extract_strided_slice %246 {offsets = [0, 0], sizes = [4, 17], strides = [1, 1]} : vector<4x256xf32> to vector<4x17xf32>
    %284 = tpu.concatenate %282, %283 in 1 : vector<4x239xf32>, vector<4x17xf32> -> vector<4x256xf32>
    %285 = vector.broadcast %55 : vector<1x256xf32> to vector<4x256xf32>
    %286 = arith.mulf %284, %285 : vector<4x256xf32>
    %287 = tpu.concatenate %251, %256, %261, %266, %246, %271, %276, %281, %286 in 0 : vector<4x256xf32>, vector<4x256xf32>, vector<4x256xf32>, vector<4x256xf32>, vector<4x256xf32>, vector<4x256xf32>, vector<4x256xf32>, vector<4x256xf32>, vector<4x256xf32> -> vector<36x256xf32>
    %cst_32 = arith.constant dense<0.000000e+00> : vector<4x256xf32>
    %288 = tpu.matmul %198, %287, %cst_32 {dimension_numbers = #tpu.dot_dimension_numbers<[1], [0], [0], [1], [0, 0, 1, 1], [], []>} : vector<4x36xf32>, vector<36x256xf32>, vector<4x256xf32> -> vector<4x256xf32>
    %289 = vector.broadcast %199 : vector<4x1xf32> to vector<4x256xf32>
    %290 = arith.addf %288, %289 : vector<4x256xf32>
    %cst_33 = arith.constant 0.000000e+00 : f32
    %291 = vector.broadcast %cst_33 : f32 to vector<4x256xf32>
    %292 = arith.maximumf %290, %291 : vector<4x256xf32>
    %293 = arith.addf %197, %292 : vector<4x256xf32>
    %294 = vector.extract_strided_slice %293 {offsets = [0, 239], sizes = [4, 17], strides = [1, 1]} : vector<4x256xf32> to vector<4x17xf32>
    %295 = vector.extract_strided_slice %293 {offsets = [0, 0], sizes = [4, 239], strides = [1, 1]} : vector<4x256xf32> to vector<4x239xf32>
    %296 = tpu.concatenate %294, %295 in 1 : vector<4x17xf32>, vector<4x239xf32> -> vector<4x256xf32>
    %297 = vector.broadcast %18 : vector<1x256xf32> to vector<4x256xf32>
    %298 = arith.mulf %296, %297 : vector<4x256xf32>
    %299 = vector.extract_strided_slice %293 {offsets = [0, 240], sizes = [4, 16], strides = [1, 1]} : vector<4x256xf32> to vector<4x16xf32>
    %300 = vector.extract_strided_slice %293 {offsets = [0, 0], sizes = [4, 240], strides = [1, 1]} : vector<4x256xf32> to vector<4x240xf32>
    %301 = tpu.concatenate %299, %300 in 1 : vector<4x16xf32>, vector<4x240xf32> -> vector<4x256xf32>
    %302 = vector.broadcast %22 : vector<1x256xf32> to vector<4x256xf32>
    %303 = arith.mulf %301, %302 : vector<4x256xf32>
    %304 = vector.extract_strided_slice %293 {offsets = [0, 241], sizes = [4, 15], strides = [1, 1]} : vector<4x256xf32> to vector<4x15xf32>
    %305 = vector.extract_strided_slice %293 {offsets = [0, 0], sizes = [4, 241], strides = [1, 1]} : vector<4x256xf32> to vector<4x241xf32>
    %306 = tpu.concatenate %304, %305 in 1 : vector<4x15xf32>, vector<4x241xf32> -> vector<4x256xf32>
    %307 = vector.broadcast %29 : vector<1x256xf32> to vector<4x256xf32>
    %308 = arith.mulf %306, %307 : vector<4x256xf32>
    %309 = vector.extract_strided_slice %293 {offsets = [0, 255], sizes = [4, 1], strides = [1, 1]} : vector<4x256xf32> to vector<4x1xf32>
    %310 = vector.extract_strided_slice %293 {offsets = [0, 0], sizes = [4, 255], strides = [1, 1]} : vector<4x256xf32> to vector<4x255xf32>
    %311 = tpu.concatenate %309, %310 in 1 : vector<4x1xf32>, vector<4x255xf32> -> vector<4x256xf32>
    %312 = vector.broadcast %33 : vector<1x256xf32> to vector<4x256xf32>
    %313 = arith.mulf %311, %312 : vector<4x256xf32>
    %314 = vector.extract_strided_slice %293 {offsets = [0, 1], sizes = [4, 255], strides = [1, 1]} : vector<4x256xf32> to vector<4x255xf32>
    %315 = vector.extract_strided_slice %293 {offsets = [0, 0], sizes = [4, 1], strides = [1, 1]} : vector<4x256xf32> to vector<4x1xf32>
    %316 = tpu.concatenate %314, %315 in 1 : vector<4x255xf32>, vector<4x1xf32> -> vector<4x256xf32>
    %317 = vector.broadcast %37 : vector<1x256xf32> to vector<4x256xf32>
    %318 = arith.mulf %316, %317 : vector<4x256xf32>
    %319 = vector.extract_strided_slice %293 {offsets = [0, 15], sizes = [4, 241], strides = [1, 1]} : vector<4x256xf32> to vector<4x241xf32>
    %320 = vector.extract_strided_slice %293 {offsets = [0, 0], sizes = [4, 15], strides = [1, 1]} : vector<4x256xf32> to vector<4x15xf32>
    %321 = tpu.concatenate %319, %320 in 1 : vector<4x241xf32>, vector<4x15xf32> -> vector<4x256xf32>
    %322 = vector.broadcast %44 : vector<1x256xf32> to vector<4x256xf32>
    %323 = arith.mulf %321, %322 : vector<4x256xf32>
    %324 = vector.extract_strided_slice %293 {offsets = [0, 16], sizes = [4, 240], strides = [1, 1]} : vector<4x256xf32> to vector<4x240xf32>
    %325 = vector.extract_strided_slice %293 {offsets = [0, 0], sizes = [4, 16], strides = [1, 1]} : vector<4x256xf32> to vector<4x16xf32>
    %326 = tpu.concatenate %324, %325 in 1 : vector<4x240xf32>, vector<4x16xf32> -> vector<4x256xf32>
    %327 = vector.broadcast %48 : vector<1x256xf32> to vector<4x256xf32>
    %328 = arith.mulf %326, %327 : vector<4x256xf32>
    %329 = vector.extract_strided_slice %293 {offsets = [0, 17], sizes = [4, 239], strides = [1, 1]} : vector<4x256xf32> to vector<4x239xf32>
    %330 = vector.extract_strided_slice %293 {offsets = [0, 0], sizes = [4, 17], strides = [1, 1]} : vector<4x256xf32> to vector<4x17xf32>
    %331 = tpu.concatenate %329, %330 in 1 : vector<4x239xf32>, vector<4x17xf32> -> vector<4x256xf32>
    %332 = vector.broadcast %55 : vector<1x256xf32> to vector<4x256xf32>
    %333 = arith.mulf %331, %332 : vector<4x256xf32>
    %334 = tpu.concatenate %298, %303, %308, %313, %293, %318, %323, %328, %333 in 0 : vector<4x256xf32>, vector<4x256xf32>, vector<4x256xf32>, vector<4x256xf32>, vector<4x256xf32>, vector<4x256xf32>, vector<4x256xf32>, vector<4x256xf32>, vector<4x256xf32> -> vector<36x256xf32>
    %cst_34 = arith.constant dense<0.000000e+00> : vector<4x256xf32>
    %335 = tpu.matmul %198, %334, %cst_34 {dimension_numbers = #tpu.dot_dimension_numbers<[1], [0], [0], [1], [0, 0, 1, 1], [], []>} : vector<4x36xf32>, vector<36x256xf32>, vector<4x256xf32> -> vector<4x256xf32>
    %336 = vector.broadcast %199 : vector<4x1xf32> to vector<4x256xf32>
    %337 = arith.addf %335, %336 : vector<4x256xf32>
    %cst_35 = arith.constant 0.000000e+00 : f32
    %338 = vector.broadcast %cst_35 : f32 to vector<4x256xf32>
    %339 = arith.maximumf %337, %338 : vector<4x256xf32>
    %340 = arith.addf %6, %339 : vector<4x256xf32>
    %c0_36 = arith.constant 0 : index
    %c0_37 = arith.constant 0 : index
    %c0_38 = arith.constant 0 : index
    %341 = vector.load %arg8[%c0_36, %c0_37, %c0_38] : memref<1x4x256xf32, #tpu.memory_space<vmem>>, vector<1x4x256xf32>
    %342 = vector.shape_cast %341 : vector<1x4x256xf32> to vector<4x256xf32>
    %343 = vector.shape_cast %340 : vector<4x256xf32> to vector<1x4x256xf32>
    tpu.vector_store %arg8[%c0_36, %c0_37, %c0_38], %343 {strides = array<i32>} : memref<1x4x256xf32, #tpu.memory_space<vmem>>, vector<1x4x256xf32>,
    return
  }
  func.func @transform_0(%arg0: i32) -> (i32, i32, i32) {
    %c0_i32 = arith.constant 0 : i32
    %c0_i32_0 = arith.constant 0 : i32
    %c0_i32_1 = arith.constant 0 : i32
    return %arg0, %c0_i32, %c0_i32_0 : i32, i32, i32
  }
  func.func @transform_1(%arg0: i32) -> (i32, i32) {
    %c0_i32 = arith.constant 0 : i32
    %c0_i32_0 = arith.constant 0 : i32
    %c0_i32_1 = arith.constant 0 : i32
    return %c0_i32, %c0_i32_0 : i32, i32
  }
  func.func @transform_2(%arg0: i32) -> (i32, i32) {
    %c0_i32 = arith.constant 0 : i32
    %c0_i32_0 = arith.constant 0 : i32
    %c0_i32_1 = arith.constant 0 : i32
    return %c0_i32, %c0_i32_0 : i32, i32
  }
  func.func @transform_3(%arg0: i32) -> (i32, i32) {
    %c0_i32 = arith.constant 0 : i32
    %c0_i32_0 = arith.constant 0 : i32
    %c0_i32_1 = arith.constant 0 : i32
    return %c0_i32, %c0_i32_0 : i32, i32
  }
  func.func @transform_4(%arg0: i32) -> (i32, i32) {
    %c0_i32 = arith.constant 0 : i32
    %c0_i32_0 = arith.constant 0 : i32
    %c0_i32_1 = arith.constant 0 : i32
    return %c0_i32, %c0_i32_0 : i32, i32
  }
  func.func @transform_5(%arg0: i32) -> (i32, i32) {
    %c0_i32 = arith.constant 0 : i32
    %c0_i32_0 = arith.constant 0 : i32
    %c0_i32_1 = arith.constant 0 : i32
    return %c0_i32, %c0_i32_0 : i32, i32
  }
  func.func @transform_6(%arg0: i32) -> (i32, i32) {
    %c0_i32 = arith.constant 0 : i32
    %c0_i32_0 = arith.constant 0 : i32
    %c0_i32_1 = arith.constant 0 : i32
    return %c0_i32, %c0_i32_0 : i32, i32
  }
  func.func @transform_7(%arg0: i32) -> (i32, i32, i32) {
    %c0_i32 = arith.constant 0 : i32
    %c0_i32_0 = arith.constant 0 : i32
    %c0_i32_1 = arith.constant 0 : i32
    return %arg0, %c0_i32, %c0_i32_0 : i32, i32, i32
  }
}

</mosaic_0001>

<bundles_post_ra>
// kernel: rrcnn_block_forward.1
= control target key start
LH: loop header
LB: loop body
LE: loop exit
PB: predicated region body
PF: predicated region fallthrough
CT: control target
= control target key end

     0   :  { %s1641_s24 = smov 0   ;;  %s2272_s0 = inlined_call_operand.vmem [shape: f32[2,8,256], index: 0, kind: input, shape index: {}]   ;;  %s2273_s1 = inlined_call_operand.vmem [shape: f32[4,8], index: 1, kind: input, shape index: {}]   ;;  %s2274_s2 = inlined_call_operand.vmem [shape: f32[4,1], index: 2, kind: input, shape index: {}]   ;;  %s2275_s3 = inlined_call_operand.vmem [shape: f32[4,36], index: 3, kind: input, shape index: {}]   ;;  %s2276_s4 = inlined_call_operand.vmem [shape: f32[4,1], index: 4, kind: input, shape index: {}]   ;;  %s2277_s5 = inlined_call_operand.vmem [shape: f32[4,36], index: 5, kind: input, shape index: {}]   ;;  %s2278_s6 = inlined_call_operand.vmem [shape: f32[4,1], index: 6, kind: input, shape index: {}]   ;;  %s2279_s7 = inlined_call_operand.vmem [shape: f32[2,4,256], index: 7, kind: output, shape index: {}]  }
   0x1 LB: > { %s1508_s25 = sadd.s32 4294967295, %s1589_s24   ;;  %p1512_p0 = scmp.ge.s32.totalorder %s1589_s24, 1  ;;  %s1589_s24 = sphi %s1641_s24, %s17_s24  }
   0x2   : > { %p237_p1 = scmp.lt.s32.totalorder %s1589_s24, 3 }
   0x4   : > { %p238_p2 = pnand %p1512_p0, %p237_p1 }
   0x5   : > { %p269_p3 = scmp.lt.s32.totalorder (!%p238_p2), %s1508_s25, 1  ;;  %s1592_s11 = smov (!%p238_p2), 111  }
   0x6   : > { %241 = sbr.rel (%p238_p2) target bundleno = 1907 (0x773), region = 48  ;;  %s1593_s12 = smov (!%p238_p2), 112  }
   0x7   : > { %s1594_s13 = smov (!%p238_p2), 127   ;;  %s1595_s14 = smov (!%p238_p2), 113  }
   0x8   : > { %s1596_s15 = smov (!%p238_p2), 1   ;;  %s1597_s16 = smov (!%p238_p2), 16  }
   0x9   : > { %s1598_s17 = smov (!%p238_p2), 15   ;;  %s1599_s18 = smov (!%p238_p2), 17  }
   0xb   : > { %v1591_v0 = vmov 0   ;;  %v282_v1 = vld [vmem:[%s2274_s2] sm:$0xf]  ;;  %s2297_s25 = smov (!%p269_p3, %s1508_s25), 1  ;;  %vm288_vm0 = vcmask 64512   ;;  %v332_v10 = vlaneseq  ;;  %vm479_vm7 = vcmask 908288  }
   0xc   : > { %1581 = vset.pattern.permute.xlu0 %v1591_v0  ;;  %1582 = vset.pattern.permute.xlu2 %v1591_v0  ;;  %s1561_s28 = sshll.u32 %s2297_s25, 4  ;;  %v281_v2 = vld [vmem:[%s2273_s1] sm:$0xf]  ;;  %vm467_vm8 = vcmask 916480   ;;  %v1600_v25 = vmov 0.0   ;;  %vm443_vm9 = vcmask 1039360  }
   0xd   : > { %285 = vperm.xlu0 %1581, %v282_v1   ;;  %s273_s8 = scalar_lea.vmem %s2272_s0, %s1561_s28  ;;  %v1697_v11 = vand.u32 127, %v332_v10  ;;  %vm511_vm11 = vcmask 1043456   ;;  %vm455_vm15 = vcmask 924672   ;;  %v388_v49 = vld [vmem:[%s2276_s4] sm:$0xf]  ;;  %s1562_s29 = sshll.u32 %s2297_s25, 3 }
   0xe   : > { %v279_v3 = vld [vmem:[%s273_s8] sm:$0xff]  ;;  %v280_v4 = vld [vmem:[%s273_s8 + $0x8] sm:$0xff]  ;;  %s278_s9 = scalar_lea.vmem %s2279_s7, %s1562_s29 }
   0xf   : > { %307 = vmatpush.msra.mxu0 %v279_v3  ;;  %327 = vmatpush.msra.mxu1 %v280_v4  ;;  %v1700_v13 = vadd.s32 128, %v1697_v11  ;;  %v337_v14 = vand.u32 15, %v1697_v11  ;;  %v335_v16 = vshra.s32 %v1697_v11, 4 }
  0x10   : > { %1517 = vmatmul.msk.f32.vlgmr.msra.gmra.mxu0 %vm288_vm0, %v281_v2  ;;  %1518 = vmatmul.msk.f32.vlgmr.msra.gmra.mxu1 %vm288_vm0, %v281_v2  ;;  %vm432_vm0 = vcmask 7168  }
  0x11   : > { %v338_v15 = vand.u32 15, %v1700_v13  ;;  %v336_v17 = vshra.s32 %v1700_v13, 4  ;;  %vm1706_vm1 = vcmp.le.s32.totalorder %v337_v14, 14  ;;  %vm1716_vm3 = vcmp.le.s32.totalorder %v335_v16, 14 }
  0x12   : > { %vm381_vm5 = vmand %vm1716_vm3, %vm1706_vm1  ;;  %v1743_v28 = vsel %vm1716_vm3, 1.0, %v1600_v25  ;;  %vm1750_vm10 = vcmp.ge.s32.totalorder %v337_v14, 1  ;;  %v1767_v40 = vsel %vm1706_vm1, 1.0, %v1600_v25 }
  0x13   : > { %vm1710_vm2 = vcmp.le.s32.totalorder %v338_v15, 14  ;;  %vm1722_vm4 = vcmp.le.s32.totalorder %v336_v17, 14  ;;  %v1735_v26 = vsel %vm381_vm5, 1.0, %v1600_v25  ;;  %vm1756_vm12 = vcmp.ge.s32.totalorder %v338_v15, 1  ;;  %vm371_vm13 = vmand %vm1716_vm3, %vm1750_vm10 }
  0x14   : > { %vm382_vm6 = vmand %vm1722_vm4, %vm1710_vm2  ;;  %v1748_v29 = vsel %vm1722_vm4, 1.0, %v1600_v25  ;;  %v1772_v41 = vsel %vm1710_vm2, 1.0, %v1600_v25  ;;  %v1794_v50 = vsel %vm371_vm13, 1.0, %v1600_v25  ;;  %v1812_v4 = vsel %vm1750_vm10, 1.0, %v1600_v25 }
  0x15   : > { %v1738_v27 = vsel %vm382_vm6, 1.0, %v1600_v25  ;;  %vm372_vm14 = vmand %vm1722_vm4, %vm1756_vm12  ;;  %vm1816_vm3 = vcmp.ge.s32.totalorder %v335_v16, 1  ;;  %vm1829_vm4 = vcmp.ge.s32.totalorder %v336_v17, 1  ;;  %vm420_vm13 = vcmask 121856  }
  0x16   : > { %v1797_v51 = vsel %vm372_vm14, 1.0, %v1600_v25  ;;  %vm355_vm5 = vmand %vm1816_vm3, %vm1706_vm1  ;;  %vm408_vm14 = vcmask 130048  }
  0x17   : > { %vm356_vm6 = vmand %vm1829_vm4, %vm1710_vm2  ;;  %v1844_v13 = vsel %vm355_vm5, 1.0, %v1600_v25  ;;  %vm396_vm5 = vcmask 138240  }
  0x18   : > { %v1847_v16 = vsel %vm356_vm6, 1.0, %v1600_v25  ;;  %vm343_vm1 = vmand %vm1816_vm3, %vm1750_vm10  ;;  %vm525_vm10 = vcmask 293888  }
  0x19   : > { %vm344_vm2 = vmand %vm1829_vm4, %vm1756_vm12  ;;  %v1878_v31 = vsel %vm343_vm1, 1.0, %v1600_v25 }
  0x7f   : > { %v286_v5 = vpop.permute.xlu0 %285 }
  0x8d   : > { %v309_v6 = vpop.f32.mrf.mxu0  ;;  %v329_v7 = vpop.f32.mrf.mxu1 }
  0x8e   : > { %v1661_v8 = vadd.f32 %v309_v6, %v286_v5  ;;  %v1663_v9 = vadd.f32 %v329_v7, %v286_v5  ;;  %v1823_v6 = vsel %vm1756_vm12, 1.0, %v1600_v25 }
  0x90   : > { %477 = vrot.lane.b32.xlu2 %v1663_v9, %s1592_s11  ;;  %465 = vrot.lane.b32.xlu1 %v1663_v9, %s1593_s12 }
  0x91   : > { %463 = vrot.lane.b32.xlu0 %v1661_v8, %s1593_s12 }
  0x98   : > { %439 = vrot.lane.b32.xlu2 %v1661_v8, %s1594_s13  ;;  %475 = vrot.lane.b32.xlu1 %v1661_v8, %s1592_s11 }
  0x99   : > { %441 = vrot.lane.b32.xlu0 %v1663_v9, %s1594_s13 }
  0xa0   : > { %453 = vrot.lane.b32.xlu2 %v1663_v9, %s1595_s14  ;;  %451 = vrot.lane.b32.xlu1 %v1661_v8, %s1595_s14 }
  0xa1   : > { %427 = vrot.lane.b32.xlu0 %v1663_v9, %s1596_s15 }
  0xa8   : > { %403 = vrot.lane.b32.xlu2 %v1663_v9, %s1597_s16  ;;  %430 = vrot.lane.b32.xlu1 %v1661_v8, %s1596_s15 }
  0xa9   : > { %406 = vrot.lane.b32.xlu0 %v1661_v8, %s1597_s16 }
  0xb0   : > { %418 = vrot.lane.b32.xlu2 %v1661_v8, %s1598_s17  ;;  %415 = vrot.lane.b32.xlu1 %v1663_v9, %s1598_s17 }
  0xb1   : > { %390 = vrot.lane.b32.xlu0 %v1663_v9, %s1599_s18 }
  0xb8   : > { %394 = vrot.lane.b32.xlu1 %v1661_v8, %s1599_s18  ;;  %522 = vperm.xlu2 %1582, %v388_v49  }
  0xea   : > { %v478_v12 = vpop.permute.xlu2 %477 }
  0xf2   : > { %v440_v22 = vpop.permute.xlu2 %439 }
  0xfa   : > { %v454_v44 = vpop.permute.xlu2 %453 }
 0x102   : > { %v466_v18 = vpop.permute.xlu1 %465  ;;  %v404_v0 = vpop.permute.xlu2 %403 }
 0x103   : > { %v464_v20 = vpop.permute.xlu0 %463 }
 0x104   : > { %v468_v36 = vsel %vm467_vm8, %v464_v20, %v466_v18  ;;  %v472_v37 = vsel %vm467_vm8, %v466_v18, %v464_v20 }
 0x105   : > { %v473_v45 = vmul.f32 %v1743_v28, %v468_v36  ;;  %v474_v46 = vmul.f32 %v1748_v29, %v472_v37 }
 0x107   : > { %v507_v53 = vrot.slane %v473_v45, 4  ;;  %v508_v54 = vrot.slane %v474_v46, 4 }
 0x10a   : > { %v476_v30 = vpop.permute.xlu1 %475  ;;  %v419_v17 = vpop.permute.xlu2 %418 }
 0x10b   : > { %v480_v32 = vsel %vm479_vm7, %v476_v30, %v478_v12  ;;  %v484_v33 = vsel %vm479_vm7, %v478_v12, %v476_v30  ;;  %v442_v34 = vpop.permute.xlu0 %441  ;;  %v1856_v30 = vsel %vm1816_vm3, 1.0, %v1600_v25 }
 0x10c   : > { %v485_v38 = vmul.f32 %v1735_v26, %v480_v32  ;;  %v486_v39 = vmul.f32 %v1738_v27, %v484_v33  ;;  %v444_v42 = vsel %vm443_vm9, %v440_v22, %v442_v34  ;;  %v448_v43 = vsel %vm443_vm9, %v442_v34, %v440_v22 }
 0x10d   : > { %v449_v47 = vmul.f32 %v1767_v40, %v444_v42  ;;  %v450_v48 = vmul.f32 %v1772_v41, %v448_v43  ;;  %v1861_v32 = vsel %vm1829_vm4, 1.0, %v1600_v25  ;;  %v1881_v42 = vsel %vm344_vm2, 1.0, %v1600_v25 }
 0x10e   : > { %1535 = vmatpush.msk.msra.mxu2 %vm511_vm11, %v485_v38  ;;  %1537 = vmatpush.msk.msra.mxu3 %vm511_vm11, %v486_v39 }
 0x10f   : > { %v501_v57 = vrot.slane %v449_v47, 4  ;;  %v502_v58 = vrot.slane %v450_v48, 4 }
 0x111   : > { %v516_v1 = vsel %vm511_vm11, %v1661_v8, %v501_v57  ;;  %v517_v2 = vsel %vm511_vm11, %v1663_v9, %v502_v58 }
 0x112   : > { %v452_v52 = vpop.permute.xlu1 %451 }
 0x113   : > { %v456_v55 = vsel %vm455_vm15, %v452_v52, %v454_v44  ;;  %v460_v56 = vsel %vm455_vm15, %v454_v44, %v452_v52  ;;  %v428_v61 = vpop.permute.xlu0 %427  ;;  %v1890_v52 = vld [vmem:[%s2275_s3] sm:$0xf] }
 0x114   : > { %v461_v59 = vmul.f32 %v1794_v50, %v456_v55  ;;  %v462_v60 = vmul.f32 %v1797_v51, %v460_v56 }
 0x116   : > { %v518_v62 = vsel %vm511_vm11, %v461_v59, %v507_v53  ;;  %v519_v63 = vsel %vm511_vm11, %v462_v60, %v508_v54  ;;  %v1898_v54 = vpop.permute.xlu2 %522 }
 0x117   : > { %547 = vmatpush.msra.mxu2 %v518_v62  ;;  %567 = vmatpush.msra.mxu3 %v519_v63 }
 0x119   : > { %548 = vmatpush.msra.mxu2 %v516_v1  ;;  %568 = vmatpush.msra.mxu3 %v517_v2 }
 0x11a   : > { %v431_v3 = vpop.permute.xlu1 %430 }
 0x11b   : > { %v433_v7 = vsel %vm432_vm0, %v431_v3, %v428_v61  ;;  %v436_v10 = vsel %vm432_vm0, %v428_v61, %v431_v3  ;;  %v407_v15 = vpop.permute.xlu0 %406 }
 0x11c   : > { %v437_v11 = vmul.f32 %v1812_v4, %v436_v10  ;;  %v438_v14 = vmul.f32 %v1823_v6, %v433_v7  ;;  %v409_v33 = vsel %vm408_vm14, %v407_v15, %v404_v0  ;;  %v412_v34 = vsel %vm408_vm14, %v404_v0, %v407_v15 }
 0x11d   : > { %v413_v38 = vmul.f32 %v1856_v30, %v412_v34  ;;  %v414_v39 = vmul.f32 %v1861_v32, %v409_v33 }
 0x11e   : > { %v495_v21 = vrot.slane %v437_v11, 4  ;;  %v496_v22 = vrot.slane %v438_v14, 4 }
 0x11f   : > { %v489_v46 = vrot.slane %v413_v38, 4  ;;  %v490_v47 = vrot.slane %v414_v39, 4 }
 0x122   : > { %v416_v18 = vpop.permute.xlu1 %415 }
 0x123   : > { %v421_v19 = vsel %vm420_vm13, %v419_v17, %v416_v18  ;;  %v424_v20 = vsel %vm420_vm13, %v416_v18, %v419_v17  ;;  %v391_v43 = vpop.permute.xlu0 %390 }
 0x124   : > { %v425_v23 = vmul.f32 %v1844_v13, %v424_v20  ;;  %v426_v24 = vmul.f32 %v1847_v16, %v421_v19 }
 0x126   : > { %v514_v36 = vsel %vm511_vm11, %v425_v23, %v495_v21  ;;  %v515_v37 = vsel %vm511_vm11, %v426_v24, %v496_v22 }
 0x127   : > { %549 = vmatpush.msra.mxu2 %v514_v36  ;;  %569 = vmatpush.msra.mxu3 %v515_v37 }
 0x12a   : > { %v395_v44 = vpop.permute.xlu1 %394 }
 0x12b   : > { %v397_v35 = vsel %vm396_vm5, %v395_v44, %v391_v43  ;;  %v400_v45 = vsel %vm396_vm5, %v391_v43, %v395_v44 }
 0x12c   : > { %v401_v48 = vmul.f32 %v1878_v31, %v400_v45  ;;  %v402_v49 = vmul.f32 %v1881_v42, %v397_v35 }
 0x12e   : > { %v512_v25 = vsel %vm511_vm11, %v401_v48, %v489_v46  ;;  %v513_v53 = vsel %vm511_vm11, %v402_v49, %v490_v47 }
 0x12f   : > { %550 = vmatpush.msra.mxu2 %v512_v25  ;;  %570 = vmatpush.msra.mxu3 %v513_v53 }
 0x130   : > { %1536 = vmatmul.msk.f32.vlgmr.msra.gmra.mxu2 %vm525_vm10, %v1890_v52  ;;  %1538 = vmatmul.msk.f32.vlgmr.msra.gmra.mxu3 %vm525_vm10, %v1890_v52 }
 0x1b3   : > { %v552_v55 = vpop.f32.mrf.mxu2  ;;  %v572_v56 = vpop.f32.mrf.mxu3 }
 0x1b4   : > { %v553_v57 = vadd.f32 %v552_v55, %v1898_v54  ;;  %v573_v58 = vadd.f32 %v572_v56, %v1898_v54 }
 0x1b6   : > { %v575_v59 = vmax.f32 %v553_v57, 0.0  ;;  %v576_v60 = vmax.f32 %v573_v58, 0.0 }
 0x1b8   : > { %v577_v61 = vadd.f32 %v575_v59, %v1661_v8  ;;  %v578_v62 = vadd.f32 %v576_v60, %v1663_v9 }
 0x1ba   : > { %658 = vrot.lane.b32.xlu2 %v577_v61, %s1592_s11  ;;  %647 = vrot.lane.b32.xlu0 %v577_v61, %s1593_s12 }
 0x1bb   : > { %649 = vrot.lane.b32.xlu1 %v578_v62, %s1593_s12 }
 0x1c2   : > { %627 = vrot.lane.b32.xlu2 %v578_v62, %s1594_s13  ;;  %660 = vrot.lane.b32.xlu0 %v578_v62, %s1592_s11 }
 0x1c3   : > { %625 = vrot.lane.b32.xlu1 %v577_v61, %s1594_s13 }
 0x1ca   : > { %614 = vrot.lane.b32.xlu2 %v578_v62, %s1596_s15  ;;  %636 = vrot.lane.b32.xlu0 %v577_v61, %s1595_s14 }
 0x1cb   : > { %638 = vrot.lane.b32.xlu1 %v578_v62, %s1595_s14 }
 0x1d2   : > { %595 = vrot.lane.b32.xlu2 %v577_v61, %s1597_s16  ;;  %617 = vrot.lane.b32.xlu0 %v577_v61, %s1596_s15 }
 0x1d3   : > { %592 = vrot.lane.b32.xlu1 %v578_v62, %s1597_s16 }
 0x1da   : > { %580 = vrot.lane.b32.xlu2 %v578_v62, %s1599_s18  ;;  %603 = vrot.lane.b32.xlu0 %v578_v62, %s1598_s17 }
 0x1db   : > { %606 = vrot.lane.b32.xlu1 %v577_v61, %s1598_s17 }
 0x1e2   : > { %584 = vrot.lane.b32.xlu0 %v577_v61, %s1599_s18 }
 0x214   : > { %v659_v63 = vpop.permute.xlu2 %658 }
 0x21c   : > { %v628_v10 = vpop.permute.xlu2 %627 }
 0x224   : > { %v615_v35 = vpop.permute.xlu2 %614 }
 0x22c   : > { %v648_v0 = vpop.permute.xlu0 %647  ;;  %v596_v56 = vpop.permute.xlu2 %595 }
 0x22d   : > { %v650_v1 = vpop.permute.xlu1 %649 }
 0x22e   : > { %v651_v14 = vsel %vm467_vm8, %v648_v0, %v650_v1  ;;  %v655_v15 = vsel %vm467_vm8, %v650_v1, %v648_v0 }
 0x22f   : > { %v656_v19 = vmul.f32 %v1743_v28, %v651_v14  ;;  %v657_v20 = vmul.f32 %v1748_v29, %v655_v15 }
 0x231   : > { %v689_v33 = vrot.slane %v656_v19, 4  ;;  %v690_v34 = vrot.slane %v657_v20, 4 }
 0x234   : > { %v661_v2 = vpop.permute.xlu0 %660  ;;  %v581_v14 = vpop.permute.xlu2 %580 }
 0x235   : > { %v662_v3 = vsel %vm479_vm7, %v659_v63, %v661_v2  ;;  %v666_v5 = vsel %vm479_vm7, %v661_v2, %v659_v63  ;;  %v626_v7 = vpop.permute.xlu1 %625 }
 0x236   : > { %v667_v12 = vmul.f32 %v1735_v26, %v662_v3  ;;  %v668_v11 = vmul.f32 %v1738_v27, %v666_v5  ;;  %v629_v17 = vsel %vm443_vm9, %v626_v7, %v628_v10  ;;  %v633_v18 = vsel %vm443_vm9, %v628_v10, %v626_v7 }
 0x237   : > { %v634_v21 = vmul.f32 %v1767_v40, %v629_v17  ;;  %v635_v22 = vmul.f32 %v1772_v41, %v633_v18 }
 0x238   : > { %1539 = vmatpush.msk.msrb.mxu0 %vm511_vm11, %v667_v12  ;;  %1541 = vmatpush.msk.msrb.mxu1 %vm511_vm11, %v668_v11 }
 0x239   : > { %v683_v38 = vrot.slane %v634_v21, 4  ;;  %v684_v39 = vrot.slane %v635_v22, 4 }
 0x23b   : > { %v697_v47 = vsel %vm511_vm11, %v577_v61, %v683_v38  ;;  %v698_v48 = vsel %vm511_vm11, %v578_v62, %v684_v39 }
 0x23c   : > { %v637_v23 = vpop.permute.xlu0 %636 }
 0x23d   : > { %v639_v24 = vpop.permute.xlu1 %638 }
 0x23e   : > { %v640_v36 = vsel %vm455_vm15, %v637_v23, %v639_v24  ;;  %v644_v37 = vsel %vm455_vm15, %v639_v24, %v637_v23 }
 0x23f   : > { %v645_v43 = vmul.f32 %v1794_v50, %v640_v36  ;;  %v646_v44 = vmul.f32 %v1797_v51, %v644_v37 }
 0x241   : > { %v699_v45 = vsel %vm511_vm11, %v645_v43, %v689_v33  ;;  %v700_v46 = vsel %vm511_vm11, %v646_v44, %v690_v34 }
 0x242   : > { %719 = vmatpush.msrb.mxu0 %v699_v45  ;;  %739 = vmatpush.msrb.mxu1 %v700_v46 }
 0x244   : > { %720 = vmatpush.msrb.mxu0 %v697_v47  ;;  %740 = vmatpush.msrb.mxu1 %v698_v48  ;;  %v618_v49 = vpop.permute.xlu0 %617 }
 0x245   : > { %v593_v25 = vpop.permute.xlu1 %592  ;;  %v619_v53 = vsel %vm432_vm0, %v618_v49, %v615_v35  ;;  %v622_v55 = vsel %vm432_vm0, %v615_v35, %v618_v49 }
 0x246   : > { %v623_v57 = vmul.f32 %v1812_v4, %v622_v55  ;;  %v624_v58 = vmul.f32 %v1823_v6, %v619_v53  ;;  %v597_v63 = vsel %vm408_vm14, %v596_v56, %v593_v25  ;;  %v600_v61 = vsel %vm408_vm14, %v593_v25, %v596_v56 }
 0x247   : > { %v601_v12 = vmul.f32 %v1856_v30, %v600_v61  ;;  %v602_v11 = vmul.f32 %v1861_v32, %v597_v63 }
 0x248   : > { %v677_v1 = vrot.slane %v623_v57, 4  ;;  %v678_v2 = vrot.slane %v624_v58, 4 }
 0x249   : > { %v671_v19 = vrot.slane %v601_v12, 4  ;;  %v672_v20 = vrot.slane %v602_v11, 4 }
 0x24c   : > { %v604_v59 = vpop.permute.xlu0 %603 }
 0x24d   : > { %v607_v60 = vpop.permute.xlu1 %606 }
 0x24e   : > { %v608_v62 = vsel %vm420_vm13, %v607_v60, %v604_v59  ;;  %v611_v0 = vsel %vm420_vm13, %v604_v59, %v607_v60 }
 0x24f   : > { %v612_v3 = vmul.f32 %v1844_v13, %v611_v0  ;;  %v613_v5 = vmul.f32 %v1847_v16, %v608_v62 }
 0x251   : > { %v695_v7 = vsel %vm511_vm11, %v612_v3, %v677_v1  ;;  %v696_v10 = vsel %vm511_vm11, %v613_v5, %v678_v2 }
 0x252   : > { %721 = vmatpush.msrb.mxu0 %v695_v7  ;;  %741 = vmatpush.msrb.mxu1 %v696_v10 }
 0x254   : > { %v585_v15 = vpop.permute.xlu0 %584 }
 0x255   : > { %v586_v17 = vsel %vm396_vm5, %v585_v15, %v581_v14  ;;  %v589_v18 = vsel %vm396_vm5, %v581_v14, %v585_v15 }
 0x256   : > { %v590_v21 = vmul.f32 %v1878_v31, %v589_v18  ;;  %v591_v22 = vmul.f32 %v1881_v42, %v586_v17 }
 0x258   : > { %v693_v23 = vsel %vm511_vm11, %v590_v21, %v671_v19  ;;  %v694_v24 = vsel %vm511_vm11, %v591_v22, %v672_v20 }
 0x259   : > { %722 = vmatpush.msrb.mxu0 %v693_v23  ;;  %742 = vmatpush.msrb.mxu1 %v694_v24 }
 0x25a   : > { %1540 = vmatmul.msk.f32.vlgmr.msrb.gmra.mxu0 %vm525_vm10, %v1890_v52  ;;  %1542 = vmatmul.msk.f32.vlgmr.msrb.gmra.mxu1 %vm525_vm10, %v1890_v52 }
 0x2d7   : > { %v724_v33 = vpop.f32.mrf.mxu0  ;;  %v744_v34 = vpop.f32.mrf.mxu1 }
 0x2d8   : > { %v725_v36 = vadd.f32 %v724_v33, %v1898_v54  ;;  %v745_v37 = vadd.f32 %v744_v34, %v1898_v54 }
 0x2da   : > { %v747_v38 = vmax.f32 %v725_v36, 0.0  ;;  %v748_v39 = vmax.f32 %v745_v37, 0.0 }
 0x2dc   : > { %v749_v43 = vadd.f32 %v747_v38, %v1661_v8  ;;  %v750_v44 = vadd.f32 %v748_v39, %v1663_v9 }
 0x2de   : > { %830 = vrot.lane.b32.xlu0 %v749_v43, %s1592_s11  ;;  %819 = vrot.lane.b32.xlu1 %v749_v43, %s1593_s12 }
 0x2df   : > { %821 = vrot.lane.b32.xlu2 %v750_v44, %s1593_s12 }
 0x2e6   : > { %799 = vrot.lane.b32.xlu0 %v750_v44, %s1594_s13  ;;  %832 = vrot.lane.b32.xlu1 %v750_v44, %s1592_s11 }
 0x2e7   : > { %797 = vrot.lane.b32.xlu2 %v749_v43, %s1594_s13 }
 0x2ee   : > { %786 = vrot.lane.b32.xlu0 %v750_v44, %s1596_s15  ;;  %808 = vrot.lane.b32.xlu1 %v749_v43, %s1595_s14 }
 0x2ef   : > { %810 = vrot.lane.b32.xlu2 %v750_v44, %s1595_s14 }
 0x2f6   : > { %767 = vrot.lane.b32.xlu0 %v749_v43, %s1597_s16  ;;  %789 = vrot.lane.b32.xlu1 %v749_v43, %s1596_s15 }
 0x2f7   : > { %764 = vrot.lane.b32.xlu2 %v750_v44, %s1597_s16 }
 0x2fe   : > { %752 = vrot.lane.b32.xlu0 %v750_v44, %s1599_s18  ;;  %775 = vrot.lane.b32.xlu1 %v750_v44, %s1598_s17 }
 0x2ff   : > { %778 = vrot.lane.b32.xlu2 %v749_v43, %s1598_s17 }
 0x306   : > { %756 = vrot.lane.b32.xlu1 %v749_v43, %s1599_s18 }
 0x339   : > { %v822_v35 = vpop.permute.xlu2 %821 }
 0x341   : > { %v798_v47 = vpop.permute.xlu2 %797 }
 0x349   : > { %v811_v63 = vpop.permute.xlu2 %810 }
 0x350   : > { %v831_v45 = vpop.permute.xlu0 %830  ;;  %v820_v46 = vpop.permute.xlu1 %819 }
 0x351   : > { %v823_v55 = vsel %vm467_vm8, %v820_v46, %v822_v35  ;;  %v827_v56 = vsel %vm467_vm8, %v822_v35, %v820_v46  ;;  %v765_v20 = vpop.permute.xlu2 %764 }
 0x352   : > { %v828_v61 = vmul.f32 %v1743_v28, %v823_v55  ;;  %v829_v62 = vmul.f32 %v1748_v29, %v827_v56 }
 0x354   : > { %v861_v3 = vrot.slane %v828_v61, 4  ;;  %v862_v5 = vrot.slane %v829_v62, 4 }
 0x358   : > { %v800_v48 = vpop.permute.xlu0 %799  ;;  %v833_v49 = vpop.permute.xlu1 %832 }
 0x359   : > { %v834_v25 = vsel %vm479_vm7, %v831_v45, %v833_v49  ;;  %v838_v53 = vsel %vm479_vm7, %v833_v49, %v831_v45  ;;  %v801_v59 = vsel %vm443_vm9, %v798_v47, %v800_v48  ;;  %v805_v60 = vsel %vm443_vm9, %v800_v48, %v798_v47  ;;  %v779_v38 = vpop.permute.xlu2 %778 }
 0x35a   : > { %v839_v57 = vmul.f32 %v1735_v26, %v834_v25  ;;  %v840_v58 = vmul.f32 %v1738_v27, %v838_v53  ;;  %v806_v0 = vmul.f32 %v1767_v40, %v801_v59  ;;  %v807_v1 = vmul.f32 %v1772_v41, %v805_v60 }
 0x35c   : > { %1543 = vmatpush.msk.msrb.mxu2 %vm511_vm11, %v839_v57  ;;  %1545 = vmatpush.msk.msrb.mxu3 %vm511_vm11, %v840_v58  ;;  %v855_v12 = vrot.slane %v806_v0, 4  ;;  %v856_v11 = vrot.slane %v807_v1, 4 }
 0x35e   : > { %v869_v21 = vsel %vm511_vm11, %v749_v43, %v855_v12  ;;  %v870_v22 = vsel %vm511_vm11, %v750_v44, %v856_v11 }
 0x360   : > { %v809_v2 = vpop.permute.xlu1 %808  ;;  %v787_v17 = vpop.permute.xlu0 %786 }
 0x361   : > { %v812_v7 = vsel %vm455_vm15, %v809_v2, %v811_v63  ;;  %v816_v10 = vsel %vm455_vm15, %v811_v63, %v809_v2 }
 0x362   : > { %v817_v14 = vmul.f32 %v1794_v50, %v812_v7  ;;  %v818_v15 = vmul.f32 %v1797_v51, %v816_v10 }
 0x364   : > { %v871_v18 = vsel %vm511_vm11, %v817_v14, %v861_v3  ;;  %v872_v19 = vsel %vm511_vm11, %v818_v15, %v862_v5 }
 0x365   : > { %891 = vmatpush.msrb.mxu2 %v871_v18  ;;  %911 = vmatpush.msrb.mxu3 %v872_v19 }
 0x367   : > { %892 = vmatpush.msrb.mxu2 %v869_v21  ;;  %912 = vmatpush.msrb.mxu3 %v870_v22 }
 0x368   : > { %v790_v23 = vpop.permute.xlu1 %789  ;;  %v768_v34 = vpop.permute.xlu0 %767 }
 0x369   : > { %v791_v24 = vsel %vm432_vm0, %v790_v23, %v787_v17  ;;  %v794_v33 = vsel %vm432_vm0, %v787_v17, %v790_v23  ;;  %v769_v48 = vsel %vm408_vm14, %v768_v34, %v765_v20  ;;  %v772_v49 = vsel %vm408_vm14, %v765_v20, %v768_v34 }
 0x36a   : > { %v795_v36 = vmul.f32 %v1812_v4, %v794_v33  ;;  %v796_v37 = vmul.f32 %v1823_v6, %v791_v24  ;;  %v773_v55 = vmul.f32 %v1856_v30, %v772_v49  ;;  %v774_v56 = vmul.f32 %v1861_v32, %v769_v48 }
 0x36c   : > { %v849_v45 = vrot.slane %v795_v36, 4  ;;  %v850_v44 = vrot.slane %v796_v37, 4  ;;  %v843_v63 = vrot.slane %v773_v55, 4  ;;  %v844_v61 = vrot.slane %v774_v56, 4 }
 0x370   : > { %v776_v39 = vpop.permute.xlu1 %775  ;;  %v753_v57 = vpop.permute.xlu0 %752 }
 0x371   : > { %v780_v35 = vsel %vm420_vm13, %v779_v38, %v776_v39  ;;  %v783_v43 = vsel %vm420_vm13, %v776_v39, %v779_v38 }
 0x372   : > { %v784_v46 = vmul.f32 %v1844_v13, %v783_v43  ;;  %v785_v47 = vmul.f32 %v1847_v16, %v780_v35 }
 0x374   : > { %v867_v25 = vsel %vm511_vm11, %v784_v46, %v849_v45  ;;  %v868_v53 = vsel %vm511_vm11, %v785_v47, %v850_v44 }
 0x375   : > { %893 = vmatpush.msrb.mxu2 %v867_v25  ;;  %913 = vmatpush.msrb.mxu3 %v868_v53 }
 0x378   : > { %v757_v58 = vpop.permute.xlu1 %756 }
 0x379   : > { %v758_v59 = vsel %vm396_vm5, %v757_v58, %v753_v57  ;;  %v761_v60 = vsel %vm396_vm5, %v753_v57, %v757_v58 }
 0x37a   : > { %v762_v62 = vmul.f32 %v1878_v31, %v761_v60  ;;  %v763_v0 = vmul.f32 %v1881_v42, %v758_v59 }
 0x37c   : > { %v865_v1 = vsel %vm511_vm11, %v762_v62, %v843_v63  ;;  %v866_v2 = vsel %vm511_vm11, %v763_v0, %v844_v61 }
 0x37d   : > { %894 = vmatpush.msrb.mxu2 %v865_v1  ;;  %914 = vmatpush.msrb.mxu3 %v866_v2 }
 0x37e   : > { %1544 = vmatmul.msk.f32.vlgmr.msrb.gmra.mxu2 %vm525_vm10, %v1890_v52  ;;  %1546 = vmatmul.msk.f32.vlgmr.msrb.gmra.mxu3 %vm525_vm10, %v1890_v52  ;;  %v922_v52 = vld [vmem:[%s2278_s6] sm:$0xf] }
 0x401   : > { %v896_v3 = vpop.f32.mrf.mxu2  ;;  %v916_v5 = vpop.f32.mrf.mxu3 }
 0x402   : > { %v897_v7 = vadd.f32 %v896_v3, %v1898_v54  ;;  %v917_v10 = vadd.f32 %v916_v5, %v1898_v54 }
 0x404   : > { %v2034_v12 = vmax.f32 %v897_v7, 0.0  ;;  %v2036_v11 = vmax.f32 %v917_v10, 0.0 }
 0x406   : > { %1002 = vrot.lane.b32.xlu1 %v2034_v12, %s1592_s11  ;;  %991 = vrot.lane.b32.xlu2 %v2034_v12, %s1593_s12 }
 0x407   : > { %993 = vrot.lane.b32.xlu0 %v2036_v11, %s1593_s12 }
 0x40e   : > { %971 = vrot.lane.b32.xlu1 %v2036_v11, %s1594_s13  ;;  %1004 = vrot.lane.b32.xlu2 %v2036_v11, %s1592_s11 }
 0x40f   : > { %969 = vrot.lane.b32.xlu0 %v2034_v12, %s1594_s13 }
 0x416   : > { %958 = vrot.lane.b32.xlu1 %v2036_v11, %s1596_s15  ;;  %980 = vrot.lane.b32.xlu2 %v2034_v12, %s1595_s14 }
 0x417   : > { %982 = vrot.lane.b32.xlu0 %v2036_v11, %s1595_s14 }
 0x41e   : > { %939 = vrot.lane.b32.xlu1 %v2034_v12, %s1597_s16  ;;  %961 = vrot.lane.b32.xlu2 %v2034_v12, %s1596_s15 }
 0x41f   : > { %936 = vrot.lane.b32.xlu0 %v2036_v11, %s1597_s16 }
 0x426   : > { %924 = vrot.lane.b32.xlu1 %v2036_v11, %s1599_s18  ;;  %947 = vrot.lane.b32.xlu2 %v2036_v11, %s1598_s17 }
 0x427   : > { %950 = vrot.lane.b32.xlu0 %v2034_v12, %s1598_s17 }
 0x42e   : > { %928 = vrot.lane.b32.xlu2 %v2034_v12, %s1599_s18 }
 0x42f   : > { %1047 = vperm.xlu0 %1581, %v922_v52  }
 0x460   : > { %v992_v54 = vpop.permute.xlu2 %991 }
 0x468   : > { %v1005_v14 = vpop.permute.xlu2 %1004 }
 0x470   : > { %v981_v20 = vpop.permute.xlu2 %980 }
 0x478   : > { %v1003_v15 = vpop.permute.xlu1 %1002  ;;  %v962_v36 = vpop.permute.xlu2 %961 }
 0x479   : > { %v1006_v17 = vsel %vm479_vm7, %v1003_v15, %v1005_v14  ;;  %v1010_v18 = vsel %vm479_vm7, %v1005_v14, %v1003_v15  ;;  %v994_v19 = vpop.permute.xlu0 %993 }
 0x47a   : > { %v1011_v21 = vmul.f32 %v1735_v26, %v1006_v17  ;;  %v1012_v22 = vmul.f32 %v1738_v27, %v1010_v18  ;;  %v995_v33 = vsel %vm467_vm8, %v992_v54, %v994_v19  ;;  %v999_v34 = vsel %vm467_vm8, %v994_v19, %v992_v54 }
 0x47b   : > { %v1000_v39 = vmul.f32 %v1743_v28, %v995_v33  ;;  %v1001_v35 = vmul.f32 %v1748_v29, %v999_v34 }
 0x47c   : > { %1547 = vmatpush.msk.msra.mxu0 %vm511_vm11, %v1011_v21  ;;  %1549 = vmatpush.msk.msra.mxu1 %vm511_vm11, %v1012_v22 }
 0x47d   : > { %v1033_v47 = vrot.slane %v1000_v39, 4  ;;  %v1034_v48 = vrot.slane %v1001_v35, 4 }
 0x480   : > { %v972_v23 = vpop.permute.xlu1 %971  ;;  %v948_v60 = vpop.permute.xlu2 %947 }
 0x481   : > { %v970_v24 = vpop.permute.xlu0 %969 }
 0x482   : > { %v973_v37 = vsel %vm443_vm9, %v970_v24, %v972_v23  ;;  %v977_v38 = vsel %vm443_vm9, %v972_v23, %v970_v24 }
 0x483   : > { %v978_v43 = vmul.f32 %v1767_v40, %v973_v37  ;;  %v979_v45 = vmul.f32 %v1772_v41, %v977_v38 }
 0x485   : > { %v1027_v53 = vrot.slane %v978_v43, 4  ;;  %v1028_v55 = vrot.slane %v979_v45, 4  ;;  %v2118_v43 = vld [vmem:[%s2277_s5] sm:$0xf] }
 0x487   : > { %v1041_v63 = vsel %vm511_vm11, %v2034_v12, %v1027_v53  ;;  %v1042_v61 = vsel %vm511_vm11, %v2036_v11, %v1028_v55 }
 0x488   : > { %v959_v44 = vpop.permute.xlu1 %958  ;;  %v929_v52 = vpop.permute.xlu2 %928 }
 0x489   : > { %v983_v46 = vpop.permute.xlu0 %982  ;;  %v963_v1 = vsel %vm432_vm0, %v962_v36, %v959_v44  ;;  %v966_v2 = vsel %vm432_vm0, %v959_v44, %v962_v36 }
 0x48a   : > { %v984_v49 = vsel %vm455_vm15, %v981_v20, %v983_v46  ;;  %v988_v25 = vsel %vm455_vm15, %v983_v46, %v981_v20  ;;  %v967_v3 = vmul.f32 %v1812_v4, %v966_v2  ;;  %v968_v5 = vmul.f32 %v1823_v6, %v963_v1 }
 0x48b   : > { %v989_v56 = vmul.f32 %v1794_v50, %v984_v49  ;;  %v990_v57 = vmul.f32 %v1797_v51, %v988_v25 }
 0x48c   : > { %v1021_v20 = vrot.slane %v967_v3, 4  ;;  %v1022_v21 = vrot.slane %v968_v5, 4 }
 0x48d   : > { %v1043_v58 = vsel %vm511_vm11, %v989_v56, %v1033_v47  ;;  %v1044_v59 = vsel %vm511_vm11, %v990_v57, %v1034_v48 }
 0x48e   : > { %1071 = vmatpush.msra.mxu0 %v1043_v58  ;;  %1091 = vmatpush.msra.mxu1 %v1044_v59 }
 0x490   : > { %1072 = vmatpush.msra.mxu0 %v1041_v63  ;;  %1092 = vmatpush.msra.mxu1 %v1042_v61  ;;  %v940_v62 = vpop.permute.xlu1 %939 }
 0x491   : > { %v937_v0 = vpop.permute.xlu0 %936 }
 0x492   : > { %v941_v7 = vsel %vm408_vm14, %v940_v62, %v937_v0  ;;  %v944_v10 = vsel %vm408_vm14, %v937_v0, %v940_v62 }
 0x493   : > { %v945_v14 = vmul.f32 %v1856_v30, %v944_v10  ;;  %v946_v15 = vmul.f32 %v1861_v32, %v941_v7 }
 0x495   : > { %v1015_v37 = vrot.slane %v945_v14, 4  ;;  %v1016_v38 = vrot.slane %v946_v15, 4 }
 0x498   : > { %v925_v54 = vpop.permute.xlu1 %924 }
 0x499   : > { %v930_v17 = vsel %vm396_vm5, %v929_v52, %v925_v54  ;;  %v933_v18 = vsel %vm396_vm5, %v925_v54, %v929_v52  ;;  %v951_v19 = vpop.permute.xlu0 %950 }
 0x49a   : > { %v952_v22 = vsel %vm420_vm13, %v951_v19, %v948_v60  ;;  %v955_v23 = vsel %vm420_vm13, %v948_v60, %v951_v19  ;;  %v934_v24 = vmul.f32 %v1878_v31, %v933_v18  ;;  %v935_v33 = vmul.f32 %v1881_v42, %v930_v17 }
 0x49b   : > { %v956_v34 = vmul.f32 %v1844_v13, %v955_v23  ;;  %v957_v36 = vmul.f32 %v1847_v16, %v952_v22 }
 0x49c   : > { %v1037_v45 = vsel %vm511_vm11, %v934_v24, %v1015_v37  ;;  %v1038_v44 = vsel %vm511_vm11, %v935_v33, %v1016_v38 }
 0x49d   : > { %v1039_v39 = vsel %vm511_vm11, %v956_v34, %v1021_v20  ;;  %v1040_v35 = vsel %vm511_vm11, %v957_v36, %v1022_v21 }
 0x49e   : > { %1073 = vmatpush.msra.mxu0 %v1039_v39  ;;  %1093 = vmatpush.msra.mxu1 %v1040_v35 }
 0x4a0   : > { %1074 = vmatpush.msra.mxu0 %v1037_v45  ;;  %1094 = vmatpush.msra.mxu1 %v1038_v44 }
 0x4a1   : > { %1548 = vmatmul.msk.f32.vlgmr.msra.gmra.mxu0 %vm525_vm10, %v2118_v43  ;;  %1550 = vmatmul.msk.f32.vlgmr.msra.gmra.mxu1 %vm525_vm10, %v2118_v43  ;;  %v2126_v46 = vpop.permute.xlu0 %1047 }
 0x51e   : > { %v1076_v47 = vpop.f32.mrf.mxu0  ;;  %v1096_v48 = vpop.f32.mrf.mxu1 }
 0x51f   : > { %v1077_v49 = vadd.f32 %v1076_v47, %v2126_v46  ;;  %v1097_v25 = vadd.f32 %v1096_v48, %v2126_v46 }
 0x521   : > { %v1099_v53 = vmax.f32 %v1077_v49, 0.0  ;;  %v1100_v55 = vmax.f32 %v1097_v25, 0.0 }
 0x523   : > { %v1101_v56 = vadd.f32 %v1099_v53, %v2034_v12  ;;  %v1102_v57 = vadd.f32 %v1100_v55, %v2036_v11 }
 0x525   : > { %1173 = vrot.lane.b32.xlu2 %v1102_v57, %s1593_s12  ;;  %1182 = vrot.lane.b32.xlu0 %v1101_v56, %s1592_s11 }
 0x526   : > { %1171 = vrot.lane.b32.xlu1 %v1101_v56, %s1593_s12 }
 0x52d   : > { %1149 = vrot.lane.b32.xlu2 %v1101_v56, %s1594_s13  ;;  %1151 = vrot.lane.b32.xlu0 %v1102_v57, %s1594_s13 }
 0x52e   : > { %1184 = vrot.lane.b32.xlu1 %v1102_v57, %s1592_s11 }
 0x535   : > { %1162 = vrot.lane.b32.xlu2 %v1102_v57, %s1595_s14  ;;  %1138 = vrot.lane.b32.xlu0 %v1102_v57, %s1596_s15 }
 0x536   : > { %1160 = vrot.lane.b32.xlu1 %v1101_v56, %s1595_s14 }
 0x53d   : > { %1116 = vrot.lane.b32.xlu2 %v1102_v57, %s1597_s16  ;;  %1119 = vrot.lane.b32.xlu0 %v1101_v56, %s1597_s16 }
 0x53e   : > { %1141 = vrot.lane.b32.xlu1 %v1101_v56, %s1596_s15 }
 0x545   : > { %1130 = vrot.lane.b32.xlu2 %v1101_v56, %s1598_s17  ;;  %1104 = vrot.lane.b32.xlu0 %v1102_v57, %s1599_s18 }
 0x546   : > { %1127 = vrot.lane.b32.xlu1 %v1102_v57, %s1598_s17 }
 0x54e   : > { %1108 = vrot.lane.b32.xlu1 %v1101_v56, %s1599_s18 }
 0x57f   : > { %v1174_v58 = vpop.permute.xlu2 %1173 }
 0x587   : > { %v1150_v63 = vpop.permute.xlu2 %1149 }
 0x58f   : > { %v1163_v54 = vpop.permute.xlu2 %1162 }
 0x597   : > { %v1183_v59 = vpop.permute.xlu0 %1182  ;;  %v1117_v35 = vpop.permute.xlu2 %1116 }
 0x598   : > { %v1172_v60 = vpop.permute.xlu1 %1171 }
 0x599   : > { %v1175_v2 = vsel %vm467_vm8, %v1172_v60, %v1174_v58  ;;  %v1179_v3 = vsel %vm467_vm8, %v1174_v58, %v1172_v60 }
 0x59a   : > { %v1180_v14 = vmul.f32 %v1743_v28, %v1175_v2  ;;  %v1181_v15 = vmul.f32 %v1748_v29, %v1179_v3 }
 0x59c   : > { %v1213_v20 = vrot.slane %v1180_v14, 4  ;;  %v1214_v21 = vrot.slane %v1181_v15, 4 }
 0x59f   : > { %v1152_v61 = vpop.permute.xlu0 %1151  ;;  %v1131_v58 = vpop.permute.xlu2 %1130 }
 0x5a0   : > { %v1185_v62 = vpop.permute.xlu1 %1184  ;;  %v1153_v10 = vsel %vm443_vm9, %v1150_v63, %v1152_v61  ;;  %v1157_v52 = vsel %vm443_vm9, %v1152_v61, %v1150_v63 }
 0x5a1   : > { %v1186_v0 = vsel %vm479_vm7, %v1183_v59, %v1185_v62  ;;  %v1190_v1 = vsel %vm479_vm7, %v1185_v62, %v1183_v59  ;;  %v1158_v17 = vmul.f32 %v1767_v40, %v1153_v10  ;;  %v1159_v18 = vmul.f32 %v1772_v41, %v1157_v52 }
 0x5a2   : > { %v1191_v5 = vmul.f32 %v1735_v26, %v1186_v0  ;;  %v1192_v7 = vmul.f32 %v1738_v27, %v1190_v1 }
 0x5a3   : > { %v1207_v24 = vrot.slane %v1158_v17, 4  ;;  %v1208_v33 = vrot.slane %v1159_v18, 4 }
 0x5a4   : > { %1551 = vmatpush.msk.msra.mxu2 %vm511_vm11, %v1191_v5  ;;  %1553 = vmatpush.msk.msra.mxu3 %vm511_vm11, %v1192_v7 }
 0x5a5   : > { %v1221_v45 = vsel %vm511_vm11, %v1101_v56, %v1207_v24  ;;  %v1222_v44 = vsel %vm511_vm11, %v1102_v57, %v1208_v33 }
 0x5a7   : > { %v1139_v37 = vpop.permute.xlu0 %1138 }
 0x5a8   : > { %v1161_v19 = vpop.permute.xlu1 %1160 }
 0x5a9   : > { %v1164_v22 = vsel %vm455_vm15, %v1161_v19, %v1163_v54  ;;  %v1168_v23 = vsel %vm455_vm15, %v1163_v54, %v1161_v19 }
 0x5aa   : > { %v1169_v34 = vmul.f32 %v1794_v50, %v1164_v22  ;;  %v1170_v36 = vmul.f32 %v1797_v51, %v1168_v23 }
 0x5ac   : > { %v1223_v38 = vsel %vm511_vm11, %v1169_v34, %v1213_v20  ;;  %v1224_v39 = vsel %vm511_vm11, %v1170_v36, %v1214_v21 }
 0x5ad   : > { %1243 = vmatpush.msra.mxu2 %v1223_v38  ;;  %1263 = vmatpush.msra.mxu3 %v1224_v39 }
 0x5af   : > { %1244 = vmatpush.msra.mxu2 %v1221_v45  ;;  %1264 = vmatpush.msra.mxu3 %v1222_v44  ;;  %v1120_v25 = vpop.permute.xlu0 %1119 }
 0x5b0   : > { %v1142_v47 = vpop.permute.xlu1 %1141  ;;  %v1121_v0 = vsel %vm408_vm14, %v1120_v25, %v1117_v35  ;;  %v1124_v1 = vsel %vm408_vm14, %v1117_v35, %v1120_v25 }
 0x5b1   : > { %v1143_v48 = vsel %vm432_vm0, %v1142_v47, %v1139_v37  ;;  %v1146_v49 = vsel %vm432_vm0, %v1139_v37, %v1142_v47  ;;  %v1125_v5 = vmul.f32 %v1856_v30, %v1124_v1  ;;  %v1126_v7 = vmul.f32 %v1861_v32, %v1121_v0 }
 0x5b2   : > { %v1147_v53 = vmul.f32 %v1812_v4, %v1146_v49  ;;  %v1148_v55 = vmul.f32 %v1823_v6, %v1143_v48 }
 0x5b3   : > { %v1195_v15 = vrot.slane %v1125_v5, 4  ;;  %v1196_v17 = vrot.slane %v1126_v7, 4 }
 0x5b4   : > { %v1201_v63 = vrot.slane %v1147_v53, 4  ;;  %v1202_v57 = vrot.slane %v1148_v55, 4 }
 0x5b7   : > { %v1105_v10 = vpop.permute.xlu0 %1104 }
 0x5b8   : > { %v1128_v59 = vpop.permute.xlu1 %1127 }
 0x5b9   : > { %v1132_v60 = vsel %vm420_vm13, %v1131_v58, %v1128_v59  ;;  %v1135_v56 = vsel %vm420_vm13, %v1128_v59, %v1131_v58 }
 0x5ba   : > { %v1136_v61 = vmul.f32 %v1844_v13, %v1135_v56  ;;  %v1137_v62 = vmul.f32 %v1847_v16, %v1132_v60 }
 0x5bc   : > { %v1219_v2 = vsel %vm511_vm11, %v1136_v61, %v1201_v63  ;;  %v1220_v3 = vsel %vm511_vm11, %v1137_v62, %v1202_v57 }
 0x5bd   : > { %1245 = vmatpush.msra.mxu2 %v1219_v2  ;;  %1265 = vmatpush.msra.mxu3 %v1220_v3 }
 0x5c0   : > { %v1109_v52 = vpop.permute.xlu1 %1108 }
 0x5c1   : > { %v1110_v54 = vsel %vm396_vm5, %v1109_v52, %v1105_v10  ;;  %v1113_v14 = vsel %vm396_vm5, %v1105_v10, %v1109_v52 }
 0x5c2   : > { %v1114_v18 = vmul.f32 %v1878_v31, %v1113_v14  ;;  %v1115_v19 = vmul.f32 %v1881_v42, %v1110_v54 }
 0x5c4   : > { %v1217_v20 = vsel %vm511_vm11, %v1114_v18, %v1195_v15  ;;  %v1218_v21 = vsel %vm511_vm11, %v1115_v19, %v1196_v17 }
 0x5c5   : > { %1246 = vmatpush.msra.mxu2 %v1217_v20  ;;  %1266 = vmatpush.msra.mxu3 %v1218_v21 }
 0x5c6   : > { %1552 = vmatmul.msk.f32.vlgmr.msra.gmra.mxu2 %vm525_vm10, %v2118_v43  ;;  %1554 = vmatmul.msk.f32.vlgmr.msra.gmra.mxu3 %vm525_vm10, %v2118_v43 }
 0x649   : > { %v1248_v22 = vpop.f32.mrf.mxu2  ;;  %v1268_v23 = vpop.f32.mrf.mxu3 }
 0x64a   : > { %v1249_v24 = vadd.f32 %v1248_v22, %v2126_v46  ;;  %v1269_v33 = vadd.f32 %v1268_v23, %v2126_v46 }
 0x64c   : > { %v1271_v34 = vmax.f32 %v1249_v24, 0.0  ;;  %v1272_v36 = vmax.f32 %v1269_v33, 0.0 }
 0x64e   : > { %v1273_v37 = vadd.f32 %v1271_v34, %v2034_v12  ;;  %v1274_v38 = vadd.f32 %v1272_v36, %v2036_v11 }
 0x650   : > { %1354 = vrot.lane.b32.xlu1 %v1273_v37, %s1592_s11  ;;  %1343 = vrot.lane.b32.xlu2 %v1273_v37, %s1593_s12 }
 0x651   : > { %1345 = vrot.lane.b32.xlu0 %v1274_v38, %s1593_s12 }
 0x658   : > { %1323 = vrot.lane.b32.xlu1 %v1274_v38, %s1594_s13  ;;  %1356 = vrot.lane.b32.xlu2 %v1274_v38, %s1592_s11 }
 0x659   : > { %1321 = vrot.lane.b32.xlu0 %v1273_v37, %s1594_s13 }
 0x660   : > { %1310 = vrot.lane.b32.xlu1 %v1274_v38, %s1596_s15  ;;  %1332 = vrot.lane.b32.xlu2 %v1273_v37, %s1595_s14 }
 0x661   : > { %1334 = vrot.lane.b32.xlu0 %v1274_v38, %s1595_s14 }
 0x668   : > { %1291 = vrot.lane.b32.xlu1 %v1273_v37, %s1597_s16  ;;  %1313 = vrot.lane.b32.xlu2 %v1273_v37, %s1596_s15 }
 0x669   : > { %1288 = vrot.lane.b32.xlu0 %v1274_v38, %s1597_s16 }
 0x670   : > { %1276 = vrot.lane.b32.xlu1 %v1274_v38, %s1599_s18  ;;  %1299 = vrot.lane.b32.xlu2 %v1274_v38, %s1598_s17 }
 0x671   : > { %1302 = vrot.lane.b32.xlu0 %v1273_v37, %s1598_s17 }
 0x678   : > { %1280 = vrot.lane.b32.xlu2 %v1273_v37, %s1599_s18 }
 0x6aa   : > { %v1344_v12 = vpop.permute.xlu2 %1343 }
 0x6b2   : > { %v1357_v11 = vpop.permute.xlu2 %1356 }
 0x6ba   : > { %v1333_v47 = vpop.permute.xlu2 %1332 }
 0x6c2   : > { %v1355_v39 = vpop.permute.xlu1 %1354  ;;  %v1314_v59 = vpop.permute.xlu2 %1313 }
 0x6c3   : > { %v1358_v35 = vsel %vm479_vm7, %v1355_v39, %v1357_v11  ;;  %v1362_v45 = vsel %vm479_vm7, %v1357_v11, %v1355_v39  ;;  %v1346_v44 = vpop.permute.xlu0 %1345 }
 0x6c4   : > { %v1363_v48 = vmul.f32 %v1735_v26, %v1358_v35  ;;  %v1364_v49 = vmul.f32 %v1738_v27, %v1362_v45  ;;  %v1347_v55 = vsel %vm467_vm8, %v1344_v12, %v1346_v44  ;;  %v1351_v58 = vsel %vm467_vm8, %v1346_v44, %v1344_v12 }
 0x6c5   : > { %v1352_v63 = vmul.f32 %v1743_v28, %v1347_v55  ;;  %v1353_v26 = vmul.f32 %v1748_v29, %v1351_v58 }
 0x6c6   : > { %1555 = vmatpush.msk.msrb.mxu0 %vm511_vm11, %v1363_v48  ;;  %1557 = vmatpush.msk.msrb.mxu1 %vm511_vm11, %v1364_v49 }
 0x6c7   : > { %v1385_v0 = vrot.slane %v1352_v63, 4  ;;  %v1386_v1 = vrot.slane %v1353_v26, 4 }
 0x6ca   : > { %v1324_v25 = vpop.permute.xlu1 %1323  ;;  %v1300_v52 = vpop.permute.xlu2 %1299 }
 0x6cb   : > { %v1322_v53 = vpop.permute.xlu0 %1321 }
 0x6cc   : > { %v1325_v60 = vsel %vm443_vm9, %v1322_v53, %v1324_v25  ;;  %v1329_v56 = vsel %vm443_vm9, %v1324_v25, %v1322_v53 }
 0x6cd   : > { %v1330_v27 = vmul.f32 %v1767_v40, %v1325_v60  ;;  %v1331_v57 = vmul.f32 %v1772_v41, %v1329_v56 }
 0x6cf   : > { %v1379_v5 = vrot.slane %v1330_v27, 4  ;;  %v1380_v7 = vrot.slane %v1331_v57, 4 }
 0x6d1   : > { %v1393_v41 = vsel %vm511_vm11, %v1273_v37, %v1379_v5  ;;  %v1394_v54 = vsel %vm511_vm11, %v1274_v38, %v1380_v7 }
 0x6d2   : > { %v1311_v61 = vpop.permute.xlu1 %1310  ;;  %v1281_v21 = vpop.permute.xlu2 %1280 }
 0x6d3   : > { %v1335_v62 = vpop.permute.xlu0 %1334  ;;  %v1315_v17 = vsel %vm432_vm0, %v1314_v59, %v1311_v61 }
 0x6d4   : > { %v1336_v2 = vsel %vm455_vm15, %v1333_v47, %v1335_v62  ;;  %v1340_v3 = vsel %vm455_vm15, %v1335_v62, %v1333_v47  ;;  %v1320_v18 = vmul.f32 %v1823_v6, %v1315_v17 }
 0x6d5   : > { %v1341_v10 = vmul.f32 %v1794_v50, %v1336_v2  ;;  %v1342_v28 = vmul.f32 %v1797_v51, %v1340_v3  ;;  %v1318_v50 = vsel %vm432_vm0, %v1311_v61, %v1314_v59 }
 0x6d6   : > { %v1319_v51 = vmul.f32 %v1812_v4, %v1318_v50  ;;  %v1374_v38 = vrot.slane %v1320_v18, 4 }
 0x6d7   : > { %v1395_v29 = vsel %vm511_vm11, %v1341_v10, %v1385_v0  ;;  %v1396_v40 = vsel %vm511_vm11, %v1342_v28, %v1386_v1 }
 0x6d8   : > { %1415 = vmatpush.msrb.mxu0 %v1395_v29  ;;  %1435 = vmatpush.msrb.mxu1 %v1396_v40  ;;  %v1373_v37 = vrot.slane %v1319_v51, 4 }
 0x6da   : > { %1416 = vmatpush.msrb.mxu0 %v1393_v41  ;;  %1436 = vmatpush.msrb.mxu1 %v1394_v54  ;;  %v1292_v14 = vpop.permute.xlu1 %1291 }
 0x6db   : > { %v1289_v15 = vpop.permute.xlu0 %1288 }
 0x6dc   : > { %v1293_v19 = vsel %vm408_vm14, %v1292_v14, %v1289_v15  ;;  %v1296_v20 = vsel %vm408_vm14, %v1289_v15, %v1292_v14 }
 0x6dd   : > { %v1297_v23 = vmul.f32 %v1856_v30, %v1296_v20  ;;  %v1298_v24 = vmul.f32 %v1861_v32, %v1293_v19 }
 0x6df   : > { %v1367_v32 = vrot.slane %v1297_v23, 4  ;;  %v1368_v35 = vrot.slane %v1298_v24, 4 }
 0x6e2   : > { %v1277_v22 = vpop.permute.xlu1 %1276 }
 0x6e3   : > { %v1282_v33 = vsel %vm396_vm5, %v1281_v21, %v1277_v22  ;;  %v1285_v34 = vsel %vm396_vm5, %v1277_v22, %v1281_v21  ;;  %v1303_v36 = vpop.permute.xlu0 %1302 }
 0x6e4   : > { %v1304_v4 = vsel %vm420_vm13, %v1303_v36, %v1300_v52  ;;  %v1307_v6 = vsel %vm420_vm13, %v1300_v52, %v1303_v36  ;;  %v1286_v12 = vmul.f32 %v1878_v31, %v1285_v34  ;;  %v1287_v11 = vmul.f32 %v1881_v42, %v1282_v33 }
 0x6e5   : > { %v1308_v39 = vmul.f32 %v1844_v13, %v1307_v6  ;;  %v1309_v30 = vmul.f32 %v1847_v16, %v1304_v4 }
 0x6e6   : > { %v1389_v47 = vsel %vm511_vm11, %v1286_v12, %v1367_v32  ;;  %v1390_v48 = vsel %vm511_vm11, %v1287_v11, %v1368_v35 }
 0x6e7   : > { %v1391_v45 = vsel %vm511_vm11, %v1308_v39, %v1373_v37  ;;  %v1392_v44 = vsel %vm511_vm11, %v1309_v30, %v1374_v38 }
 0x6e8   : > { %1417 = vmatpush.msrb.mxu0 %v1391_v45  ;;  %1437 = vmatpush.msrb.mxu1 %v1392_v44 }
 0x6ea   : > { %1418 = vmatpush.msrb.mxu0 %v1389_v47  ;;  %1438 = vmatpush.msrb.mxu1 %v1390_v48 }
 0x6eb   : > { %1556 = vmatmul.msk.f32.vlgmr.msrb.gmra.mxu0 %vm525_vm10, %v2118_v43  ;;  %1558 = vmatmul.msk.f32.vlgmr.msrb.gmra.mxu1 %vm525_vm10, %v2118_v43 }
 0x768   : > { %v1420_v13 = vpop.f32.mrf.mxu0  ;;  %v1440_v16 = vpop.f32.mrf.mxu1 }
 0x769   : > { %v1421_v31 = vadd.f32 %v1420_v13, %v2126_v46  ;;  %v1441_v42 = vadd.f32 %v1440_v16, %v2126_v46 }
 0x76b   : > { %v1443_v49 = vmax.f32 %v1421_v31, 0.0  ;;  %v1444_v25 = vmax.f32 %v1441_v42, 0.0 }
 0x76d   : > { %v1446_v53 = vadd.f32 %v1444_v25, %v1663_v9  ;;  %v1445_v55 = vadd.f32 %v1443_v49, %v1661_v8 }
 0x76f   : > { %v1449_v58 = vrot.slane %v1446_v53, 4 }
 0x771   : > { %v1450_v43 = vsel %vm511_vm11, %v1445_v55, %v1449_v58 }
 0x772   : > { %1452 = vst [vmem:[%s278_s9] sm:$0xff] %v1450_v43 }
 0x773 PF: > { %s17_s24 = sadd.s32 1, %s1589_s24  }
 0x774   : > { %p14_p4 = scmp.ge.s32.totalorder %s17_s24, 4  }
 0x776   :  { %16 = sbr.rel (!%p14_p4) target bundleno = 1 (0x1), region = 78 }

</bundles_post_ra>
